<compile_context>
chip_gen: v6e
topology: v6e:2x2x1
jax: 0.10.0
libtpu: 0.0.40
codegen_flags: <defaults>
</compile_context>

<pallas_src>
import math
import functools

import jax
import jax.numpy as jnp
from jax import lax
from jax.experimental import pallas as pl
from jax.experimental.pallas import tpu as pltpu


_LANE = 128
_VMEM_LIMIT = 32 * 1024 * 1024   # explicit scoped-VMEM limit, safe on all gens


def _round_up(x, m):
    return (x + m - 1) // m * m


# ----------------------------------------------------------------------------
# In-kernel helpers (traced inside the Pallas kernels)
# ----------------------------------------------------------------------------
def _zero_halo(x):
    """(H, W, C) -> (H+2, W+2, C) with a zero border (== conv padding=1)."""
    H, W, C = x.shape
    zr = jnp.zeros((1, W, C), x.dtype)
    x = jnp.concatenate([zr, x, zr], axis=0)
    zc = jnp.zeros((H + 2, 1, C), x.dtype)
    return jnp.concatenate([zc, x, zc], axis=1)


def _im2col9(x):
    """(H, W, C) -> (H*W, 9*C) im2col slab for a 3x3 'same' conv.

    Channel order is (dy, dx, c) row-major, matching w.reshape(9*C, Cout) of
    an HWIO weight.  Only the two dx != 0 column shifts are unaligned sublane
    slices; the dy shifts slice the leading axis (free)."""
    H, W, C = x.shape
    xp = _zero_halo(x)                                               # (H+2, W+2, C)
    cols = jnp.concatenate(
        [xp[:, 0:W], xp[:, 1:W + 1], xp[:, 2:W + 2]], axis=-1)       # (H+2, W, 3C)
    slab = jnp.concatenate(
        [cols[0:H], cols[1:H + 1], cols[2:H + 2]], axis=-1)          # (H, W, 9C)
    return slab.reshape(H * W, 9 * C)


# ----------------------------------------------------------------------------
# Pallas kernels
# ----------------------------------------------------------------------------
def _conv3x3_kernel(x_ref, w_ref, b_ref, o_ref, *, relu_input):
    """x_ref: (1,H,W,Cin) f32 | w_ref: (9*Cin,CoutP) bf16 | b_ref: (1,CoutP) f32
       o_ref: (1,H,W,CoutP) f32."""
    x = x_ref[0]
    if relu_input:
        x = jnp.maximum(x, 0.0)
    H, W, _ = x.shape
    coutp = o_ref.shape[-1]
    slab = _im2col9(x).astype(jnp.bfloat16)
    y = jnp.dot(slab, w_ref[...], preferred_element_type=jnp.float32)
    y = y + b_ref[...]
    o_ref[0] = y.reshape(H, W, coutp).astype(o_ref.dtype)


def _g_res1_kernel(up_ref, mem_ref, skip_ref, w1_ref, b1_ref, *rest, has_down):
    """Fused: g = up (channel-padded) + mem + skip;
              r1 = conv1(relu(g));  gd = down(g)  (or g if no down conv)."""
    if has_down:
        wd_ref, bd_ref, r1_ref, gd_ref = rest
    else:
        r1_ref, gd_ref = rest

    H, W, cp = mem_ref.shape[1], mem_ref.shape[2], mem_ref.shape[3]
    up = up_ref[0]
    c_up = up.shape[-1]
    if c_up < cp:
        up = jnp.concatenate(
            [up, jnp.zeros((H, W, cp - c_up), up.dtype)], axis=-1)
    g = up + mem_ref[0] + skip_ref[0]                        # (H, W, Cp) f32

    slab = _im2col9(g).astype(jnp.bfloat16)                  # (H*W, 9*Cp)
    slab_relu = jnp.maximum(slab, 0)                         # relu commutes with zero halo

    r1 = jnp.dot(slab_relu, w1_ref[...],
                 preferred_element_type=jnp.float32) + b1_ref[...]
    r1_ref[0] = r1.reshape(H, W, r1_ref.shape[-1]).astype(r1_ref.dtype)

    if has_down:
        gd = jnp.dot(slab, wd_ref[...],
                     preferred_element_type=jnp.float32) + bd_ref[...]
        gd_ref[0] = gd.reshape(H, W, gd_ref.shape[-1]).astype(gd_ref.dtype)
    else:
        gd_ref[0] = g.astype(gd_ref.dtype)


def _conv2_add_kernel(r1_ref, gd_ref, w2_ref, b2_ref, o_ref):
    """out = conv2(relu(r1)) + gd  (residual add fused into the conv kernel)."""
    H, W = r1_ref.shape[1], r1_ref.shape[2]
    coutp = o_ref.shape[-1]
    r = jnp.maximum(r1_ref[0], 0.0)
    slab = _im2col9(r).astype(jnp.bfloat16)
    y = jnp.dot(slab, w2_ref[...], preferred_element_type=jnp.float32)
    y = y + b2_ref[...]
    o_ref[0] = (y.reshape(H, W, coutp) + gd_ref[0]).astype(o_ref.dtype)


# ----------------------------------------------------------------------------
# Wrappers (weight prep + pallas_call plumbing)
# ----------------------------------------------------------------------------
def _prep_w(w_hwio, cin_p, cout_p):
    """HWIO (3,3,Cin,Cout) -> bf16 (9*cin_p, cout_p), zero-padded channels."""
    kh, kw, cin, cout = w_hwio.shape
    w = jnp.pad(w_hwio, ((0, 0), (0, 0), (0, cin_p - cin), (0, cout_p - cout)))
    return w.reshape(kh * kw * cin_p, cout_p).astype(jnp.bfloat16)


def _prep_b(b, cout_p):
    return jnp.pad(b, (0, cout_p - b.shape[0])).reshape(1, cout_p).astype(jnp.float32)


def _mosaic_params():
    return pltpu.CompilerParams(dimension_semantics=("parallel",),
                                vmem_limit_bytes=_VMEM_LIMIT)


def conv3x3_nhwc(x, w_hwio, b, *, relu_input=False):
    """3x3 'same' conv.  x: (N,H,W,Cin) f32 -> (N,H,W,CoutP) f32 with Cout
    padded to a multiple of 128 (padded channels are exactly zero)."""
    N, H, W, cin = x.shape
    cout = w_hwio.shape[-1]
    coutp = _round_up(cout, _LANE)
    wp = _prep_w(w_hwio, cin, coutp)
    bp = _prep_b(b, coutp)
    kernel = functools.partial(_conv3x3_kernel, relu_input=relu_input)
    return pl.pallas_call(
        kernel,
        out_shape=jax.ShapeDtypeStruct((N, H, W, coutp), jnp.float32),
        grid_spec=pltpu.PrefetchScalarGridSpec(
            num_scalar_prefetch=0,
            grid=(N,),
            in_specs=[
                pl.BlockSpec((1, H, W, cin), lambda n: (n, 0, 0, 0)),
                pl.BlockSpec((9 * cin, coutp), lambda n: (0, 0)),
                pl.BlockSpec((1, coutp), lambda n: (0, 0)),
            ],
            out_specs=pl.BlockSpec((1, H, W, coutp), lambda n: (n, 0, 0, 0)),
        ),
        compiler_params=_mosaic_params(),
    )(x, wp, bp)


def fused_group_res_stage1(g_up, mem_p, skip_p, params, *, no, g_up_dim, g_out_dim):
    """g = g_up + mem + broadcast(skip);  r1 = conv1(relu(g));  gd = down(g)|g."""
    N, H, W, c_up = g_up.shape
    cp = mem_p.shape[-1]
    coutp = _round_up(g_out_dim, _LANE)
    has_down = g_up_dim != g_out_dim
    gd_c = coutp if has_down else cp

    w1 = _prep_w(params["res_conv1_w"], cp, coutp)
    b1 = _prep_b(params["res_conv1_b"], coutp)
    inputs = [g_up, mem_p, skip_p, w1, b1]
    in_specs = [
        pl.BlockSpec((1, H, W, c_up), lambda n: (n, 0, 0, 0)),
        pl.BlockSpec((1, H, W, cp), lambda n: (n, 0, 0, 0)),
        # skip is shared by all `no` objects of a batch element: index it with
        # n // no instead of materializing jnp.repeat(skip, no) in HBM.
        pl.BlockSpec((1, H, W, cp), lambda n: (n // no, 0, 0, 0)),
        pl.BlockSpec((9 * cp, coutp), lambda n: (0, 0)),
        pl.BlockSpec((1, coutp), lambda n: (0, 0)),
    ]
    if has_down:
        inputs += [_prep_w(params["res_down_w"], cp, coutp),
                   _prep_b(params["res_down_b"], coutp)]
        in_specs += [pl.BlockSpec((9 * cp, coutp), lambda n: (0, 0)),
                     pl.BlockSpec((1, coutp), lambda n: (0, 0))]

    kernel = functools.partial(_g_res1_kernel, has_down=has_down)
    r1, gd = pl.pallas_call(
        kernel,
        out_shape=(jax.ShapeDtypeStruct((N, H, W, coutp), jnp.float32),
                   jax.ShapeDtypeStruct((N, H, W, gd_c), jnp.float32)),
        grid_spec=pltpu.PrefetchScalarGridSpec(
            num_scalar_prefetch=0,
            grid=(N,),
            in_specs=in_specs,
            out_specs=[
                pl.BlockSpec((1, H, W, coutp), lambda n: (n, 0, 0, 0)),
                pl.BlockSpec((1, H, W, gd_c), lambda n: (n, 0, 0, 0)),
            ],
        ),
        compiler_params=_mosaic_params(),
    )(*inputs)
    return r1, gd


def conv2_plus_residual(r1, gd, w_hwio, b):
    N, H, W, cp = r1.shape
    cout = w_hwio.shape[-1]
    coutp = _round_up(cout, _LANE)
    assert gd.shape[-1] == coutp
    w2 = _prep_w(w_hwio, cp, coutp)
    b2 = _prep_b(b, coutp)
    return pl.pallas_call(
        _conv2_add_kernel,
        out_shape=jax.ShapeDtypeStruct((N, H, W, coutp), jnp.float32),
        grid_spec=pltpu.PrefetchScalarGridSpec(
            num_scalar_prefetch=0,
            grid=(N,),
            in_specs=[
                pl.BlockSpec((1, H, W, cp), lambda n: (n, 0, 0, 0)),
                pl.BlockSpec((1, H, W, coutp), lambda n: (n, 0, 0, 0)),
                pl.BlockSpec((9 * cp, coutp), lambda n: (0, 0)),
                pl.BlockSpec((1, coutp), lambda n: (0, 0)),
            ],
            out_specs=pl.BlockSpec((1, H, W, coutp), lambda n: (n, 0, 0, 0)),
        ),
        compiler_params=_mosaic_params(),
    )(r1, gd, w2, b2)


# ----------------------------------------------------------------------------
# Plain-JAX glue: bilinear 2x upsample (PyTorch align_corners=False semantics)
# ----------------------------------------------------------------------------
# TODO(synk): fusing this into the stage-1 kernel needs a W-axis (sublane)
# interleave that Mosaic does not lower robustly; kept in XLA (half-res input).
def _up2x_last_axis(x):
    prev = jnp.concatenate([x[..., :1], x[..., :-1]], axis=-1)   # x[max(i-1, 0)]
    nxt = jnp.concatenate([x[..., 1:], x[..., -1:]], axis=-1)    # x[min(i+1, L-1)]
    even = 0.25 * prev + 0.75 * x                                # out[2i]
    odd = 0.75 * x + 0.25 * nxt                                  # out[2i+1]
    out = jnp.stack([even, odd], axis=-1)
    return out.reshape(*x.shape[:-1], 2 * x.shape[-1])


def upsample2x_bilinear(x):
    """x: (..., H, W) -> (..., 2H, 2W), matches F.interpolate(scale_factor=2,
    mode='bilinear', align_corners=False)."""
    x = _up2x_last_axis(x)                 # upsample W
    x = jnp.swapaxes(x, -1, -2)
    x = _up2x_last_axis(x)                 # upsample H
    return jnp.swapaxes(x, -1, -2)


# ----------------------------------------------------------------------------
# Module forward
# ----------------------------------------------------------------------------
def _to_nhwc(x):
    return jnp.transpose(x, (0, 2, 3, 1))


def _to_nchw(x):
    return jnp.transpose(x, (0, 3, 1, 2))


def scale_upsample_block_forward(params, skip_f, up_g, mem_f, *,
                                 g_up_dim, g_out_dim, scale_factor=2):
    """skip_f: (B, skip_dim, H, W)
       up_g:   (B, no, g_up_dim, H//2, W//2)
       mem_f:  (B, no, g_up_dim//2, H, W)
       returns (B, no, g_out_dim, H, W)."""
    assert scale_factor == 2
    B, no = mem_f.shape[:2]
    H, W = skip_f.shape[-2:]

    # skip_conv / mem_conv (outputs channel-padded to 128; pad channels == 0)
    skip_p = conv3x3_nhwc(_to_nhwc(skip_f), params["skip_w"], params["skip_b"])
    mem_flat = mem_f.reshape(B * no, *mem_f.shape[2:])
    mem_p = conv3x3_nhwc(_to_nhwc(mem_flat), params["mem_w"], params["mem_b"])

    # bilinear 2x upsample of the groups (half-res tensor, plain-JAX glue)
    g_up = upsample2x_bilinear(up_g.reshape(B * no, *up_g.shape[2:]))
    g_up = _to_nhwc(g_up)                                   # (B*no, H, W, g_up_dim)

    # fused: g = g_up + mem + skip ; r1 = conv1(relu(g)) ; gd = down(g) | g
    r1, gd = fused_group_res_stage1(g_up, mem_p, skip_p, params, no=no,
                                    g_up_dim=g_up_dim, g_out_dim=g_out_dim)
    # fused: out = conv2(relu(r1)) + gd
    out_p = conv2_plus_residual(r1, gd,
                                params["res_conv2_w"], params["res_conv2_b"])

    out = out_p[..., :g_out_dim]                            # drop lane padding
    return _to_nchw(out).reshape(B, no, g_out_dim, H, W)


# ----------------------------------------------------------------------------
# Deterministic parameter init (Conv2d-style uniform(+-1/sqrt(fan_in)))
# ----------------------------------------------------------------------------
def _init_conv(key, cin, cout):
    kw, kb = jax.random.split(key)
    bound = 1.0 / math.sqrt(cin * 9)
    w = jax.random.uniform(kw, (3, 3, cin, cout), minval=-bound, maxval=bound,
                           dtype=jnp.float32)
    b = jax.random.uniform(kb, (cout,), minval=-bound, maxval=bound,
                           dtype=jnp.float32)
    return w, b


def init_params(key, skip_dim, g_up_dim, g_out_dim):
    ks = jax.random.split(key, 5)
    p = {}
    p["skip_w"], p["skip_b"] = _init_conv(ks[0], skip_dim, g_up_dim)
    p["mem_w"], p["mem_b"] = _init_conv(ks[1], g_up_dim // 2, g_up_dim)
    p["res_conv1_w"], p["res_conv1_b"] = _init_conv(ks[2], g_up_dim, g_out_dim)
    p["res_conv2_w"], p["res_conv2_b"] = _init_conv(ks[3], g_out_dim, g_out_dim)
    if g_up_dim != g_out_dim:
        p["res_down_w"], p["res_down_b"] = _init_conv(ks[4], g_up_dim, g_out_dim)
    return p


# ----------------------------------------------------------------------------
# Pure-JAX f32 reference (XLA convs) for a numeric sanity check
# ----------------------------------------------------------------------------
def _ref_conv(x, w, b, relu_input=False):
    if relu_input:
        x = jnp.maximum(x, 0.0)
    y = lax.conv_general_dilated(x, w, (1, 1), "SAME",
                                 dimension_numbers=("NHWC", "HWIO", "NHWC"))
    return y + b


def reference_forward(params, skip_f, up_g, mem_f, *, g_up_dim, g_out_dim):
    B, no = mem_f.shape[:2]
    H, W = skip_f.shape[-2:]
    skip = _ref_conv(_to_nhwc(skip_f), params["skip_w"], params["skip_b"])
    mem = _ref_conv(_to_nhwc(mem_f.reshape(B * no, *mem_f.shape[2:])),
                    params["mem_w"], params["mem_b"])
    g = _to_nhwc(upsample2x_bilinear(up_g.reshape(B * no, *up_g.shape[2:])))
    g = g + mem + jnp.repeat(skip, no, axis=0)
    r = _ref_conv(g, params["res_conv1_w"], params["res_conv1_b"], relu_input=True)
    r = _ref_conv(r, params["res_conv2_w"], params["res_conv2_b"], relu_input=True)
    gd = _ref_conv(g, params["res_down_w"], params["res_down_b"]) \
        if g_up_dim != g_out_dim else g
    out = r + gd
    return _to_nchw(out).reshape(B, no, g_out_dim, H, W)


if __name__ == "__main__":
    skip_dim, g_up_dim, g_out_dim = 4, 8, 16
    B, no, H, W = 2, 2, 16, 16

    key = jax.random.PRNGKey(0)
    kp, k1, k2, k3 = jax.random.split(key, 4)
    params = init_params(kp, skip_dim, g_up_dim, g_out_dim)

    skip_f = jax.random.normal(k1, (B, skip_dim, H, W), jnp.float32)
    up_g = jax.random.normal(k2, (B, no, g_up_dim, H // 2, W // 2), jnp.float32)
    mem_f = jax.random.normal(k3, (B, no, g_up_dim // 2, H, W), jnp.float32)

    out = scale_upsample_block_forward(params, skip_f, up_g, mem_f,
                                       g_up_dim=g_up_dim, g_out_dim=g_out_dim)
    out = jax.block_until_ready(out)
    assert out.shape == (B, no, g_out_dim, H, W), out.shape

    ref = reference_forward(params, skip_f, up_g, mem_f,
                            g_up_dim=g_up_dim, g_out_dim=g_out_dim)
    ref = jax.block_until_ready(ref)
    # bf16 MXU operands vs f32 XLA reference -> loosened tolerance.
    assert jnp.allclose(out, ref, atol=1e-1, rtol=1e-1), \
        float(jnp.max(jnp.abs(out - ref)))

    print("KERNEL_OK")
</pallas_src>

<mosaic_0001>
module attributes {stable_mosaic.version = 11 : i64} {
  func.func @_conv3x3_kernel(%arg0: i32, %arg1: memref<1x16x16x4xf32, #tpu.memory_space<vmem>>, %arg2: memref<36x128xbf16, #tpu.memory_space<vmem>>, %arg3: memref<1x128xf32, #tpu.memory_space<vmem>>, %arg4: memref<1x16x16x128xf32, #tpu.memory_space<vmem>>) attributes {dimension_semantics = [#tpu.dimension_semantics<parallel>], iteration_bounds = array<i64: 2>, scalar_prefetch = 0 : i64, scratch_operands = 0 : i64, tpu.core_type = #tpu.core_type<tc>, window_params = [{transform_indices = @transform_0, window_bounds = array<i64: 1, 16, 16, 4>}, {pipeline_mode = #tpu.pipeline_mode<synchronous>, transform_indices = @transform_1, window_bounds = array<i64: 36, 128>}, {pipeline_mode = #tpu.pipeline_mode<synchronous>, transform_indices = @transform_2, window_bounds = array<i64: 1, 128>}, {transform_indices = @transform_3, window_bounds = array<i64: 1, 16, 16, 128>}]} {
    %c0 = arith.constant 0 : index
    %c0_0 = arith.constant 0 : index
    %c0_1 = arith.constant 0 : index
    %c0_2 = arith.constant 0 : index
    %0 = vector.load %arg1[%c0, %c0_0, %c0_1, %c0_2] : memref<1x16x16x4xf32, #tpu.memory_space<vmem>>, vector<1x16x16x4xf32>
    %1 = vector.shape_cast %0 : vector<1x16x16x4xf32> to vector<16x16x4xf32>
    %cst = arith.constant 0.000000e+00 : f32
    %2 = vector.broadcast %cst : f32 to vector<1x16x4xf32>
    %3 = tpu.concatenate %2, %1, %2 in 0 : vector<1x16x4xf32>, vector<16x16x4xf32>, vector<1x16x4xf32> -> vector<18x16x4xf32>
    %cst_3 = arith.constant 0.000000e+00 : f32
    %4 = vector.broadcast %cst_3 : f32 to vector<18x1x4xf32>
    %5 = tpu.concatenate %4, %3, %4 in 1 : vector<18x1x4xf32>, vector<18x16x4xf32>, vector<18x1x4xf32> -> vector<18x18x4xf32>
    %6 = vector.extract_strided_slice %5 {offsets = [0, 0, 0], sizes = [18, 16, 4], strides = [1, 1, 1]} : vector<18x18x4xf32> to vector<18x16x4xf32>
    %7 = vector.extract_strided_slice %5 {offsets = [0, 1, 0], sizes = [18, 16, 4], strides = [1, 1, 1]} : vector<18x18x4xf32> to vector<18x16x4xf32>
    %8 = vector.extract_strided_slice %5 {offsets = [0, 2, 0], sizes = [18, 16, 4], strides = [1, 1, 1]} : vector<18x18x4xf32> to vector<18x16x4xf32>
    %9 = tpu.concatenate %6, %7, %8 in 2 : vector<18x16x4xf32>, vector<18x16x4xf32>, vector<18x16x4xf32> -> vector<18x16x12xf32>
    %10 = vector.extract_strided_slice %9 {offsets = [0, 0, 0], sizes = [16, 16, 12], strides = [1, 1, 1]} : vector<18x16x12xf32> to vector<16x16x12xf32>
    %11 = vector.extract_strided_slice %9 {offsets = [1, 0, 0], sizes = [16, 16, 12], strides = [1, 1, 1]} : vector<18x16x12xf32> to vector<16x16x12xf32>
    %12 = vector.extract_strided_slice %9 {offsets = [2, 0, 0], sizes = [16, 16, 12], strides = [1, 1, 1]} : vector<18x16x12xf32> to vector<16x16x12xf32>
    %13 = tpu.concatenate %10, %11, %12 in 2 : vector<16x16x12xf32>, vector<16x16x12xf32>, vector<16x16x12xf32> -> vector<16x16x36xf32>
    %14 = vector.shape_cast %13 : vector<16x16x36xf32> to vector<256x36xf32>
    %15 = arith.truncf %14 : vector<256x36xf32> to vector<256x36xbf16>
    %c0_4 = arith.constant 0 : index
    %c0_5 = arith.constant 0 : index
    %16 = vector.load %arg2[%c0_4, %c0_5] : memref<36x128xbf16, #tpu.memory_space<vmem>>, vector<36x128xbf16>
    %cst_6 = arith.constant dense<0.000000e+00> : vector<256x128xf32>
    %17 = tpu.matmul %15, %16, %cst_6 {dimension_numbers = #tpu.dot_dimension_numbers<[1], [0], [0], [1], [0, 0, 1, 1], [], []>} : vector<256x36xbf16>, vector<36x128xbf16>, vector<256x128xf32> -> vector<256x128xf32>
    %c0_7 = arith.constant 0 : index
    %c0_8 = arith.constant 0 : index
    %18 = vector.load %arg3[%c0_7, %c0_8] : memref<1x128xf32, #tpu.memory_space<vmem>>, vector<1x128xf32>
    %19 = vector.broadcast %18 : vector<1x128xf32> to vector<256x128xf32>
    %20 = arith.addf %17, %19 : vector<256x128xf32>
    %21 = vector.shape_cast %20 : vector<256x128xf32> to vector<16x16x128xf32>
    %c0_9 = arith.constant 0 : index
    %c0_10 = arith.constant 0 : index
    %c0_11 = arith.constant 0 : index
    %c0_12 = arith.constant 0 : index
    %22 = vector.load %arg4[%c0_9, %c0_10, %c0_11, %c0_12] : memref<1x16x16x128xf32, #tpu.memory_space<vmem>>, vector<1x16x16x128xf32>
    %23 = vector.shape_cast %22 : vector<1x16x16x128xf32> to vector<16x16x128xf32>
    %24 = vector.shape_cast %21 : vector<16x16x128xf32> to vector<1x16x16x128xf32>
    tpu.vector_store %arg4[%c0_9, %c0_10, %c0_11, %c0_12], %24 {strides = array<i32>} : memref<1x16x16x128xf32, #tpu.memory_space<vmem>>, vector<1x16x16x128xf32>,
    return
  }
  func.func @transform_0(%arg0: i32) -> (i32, i32, i32, i32) {
    %c0_i32 = arith.constant 0 : i32
    %c0_i32_0 = arith.constant 0 : i32
    %c0_i32_1 = arith.constant 0 : i32
    %c0_i32_2 = arith.constant 0 : i32
    return %arg0, %c0_i32, %c0_i32_0, %c0_i32_1 : i32, i32, i32, i32
  }
  func.func @transform_1(%arg0: i32) -> (i32, i32) {
    %c0_i32 = arith.constant 0 : i32
    %c0_i32_0 = arith.constant 0 : i32
    %c0_i32_1 = arith.constant 0 : i32
    return %c0_i32, %c0_i32_0 : i32, i32
  }
  func.func @transform_2(%arg0: i32) -> (i32, i32) {
    %c0_i32 = arith.constant 0 : i32
    %c0_i32_0 = arith.constant 0 : i32
    %c0_i32_1 = arith.constant 0 : i32
    return %c0_i32, %c0_i32_0 : i32, i32
  }
  func.func @transform_3(%arg0: i32) -> (i32, i32, i32, i32) {
    %c0_i32 = arith.constant 0 : i32
    %c0_i32_0 = arith.constant 0 : i32
    %c0_i32_1 = arith.constant 0 : i32
    %c0_i32_2 = arith.constant 0 : i32
    return %arg0, %c0_i32, %c0_i32_0, %c0_i32_1 : i32, i32, i32, i32
  }
}

</mosaic_0001>

<bundles_post_ra>
// kernel: tpu_custom_call.1
= control target key start
LH: loop header
LB: loop body
LE: loop exit
PB: predicated region body
PF: predicated region fallthrough
CT: control target
= control target key end

     0   :  { %8 = vsyncpa [#allocation3], 0  ;;  %s2949_s0 = inlined_call_operand.vmem [shape: f32[2,16,16,4], index: 0, kind: input, shape index: {}]   ;;  %s2950_s1 = inlined_call_operand.vmem [shape: bf16[36,128], index: 1, kind: input, shape index: {}]   ;;  %s2951_s2 = inlined_call_operand.vmem [shape: f32[1,128], index: 2, kind: input, shape index: {}]   ;;  %s2952_s3 = inlined_call_operand.hbm [shape: f32[2,16,16,128], index: 3, kind: output, shape index: {}]  }
   0x1   :  { %10 = vsyncpa [#allocation3 + $0x1], 0  ;;  %s2073_s12 = smov 0   ;;  %s2075_s13 = smov 0  }
   0x2   :  { %s2077_s14 = smov 0   ;;  %s2079_s15 = smov 0  }
   0x3 LB: > { %s2094_s16 = sadd.s32 4294967295, %s2044_s15   ;;  %s1507_s17 = sadd.s32 4294967294, %s2044_s15   ;;  %s2044_s15 = sphi %s2079_s15, %s2958_s15   ;;  %s2040_s14 = sphi %s2077_s14, %s2957_s14   ;;  %s2036_s13 = sphi %s2075_s13, %s2956_s13   ;;  %s2032_s12 = sphi %s2073_s12, %s2955_s12  }
   0x4   : > { %s2098_s18 = sadd.s32 1, %s2044_s15   ;;  %s91_s19 = sadd.s32 1, %s2040_s14 }
   0x5   : > { %s88_s20 = ssub.s32 %s2044_s15, %s2098_s18  ;;  %p101_p0 = scmp.ne.s32.totalorder %s2040_s14, %s2036_s13 }
   0x6   : > { %p89_p1 = scmp.eq.s32.totalorder %s88_s20, 0  ;;  %p102_p2 = scmp.eq.s32.totalorder %s2094_s16, 1 }
   0x7   : > { %p107_p3 = scmp.ne.s32.totalorder %s2036_s13, %s2032_s12  ;;  %p108_p4 = scmp.eq.s32.totalorder %s1507_s17, 1 }
   0x8   : > { %s2109_s21 = scalar_select %p89_p1, %s2040_s14, %s91_s19  }
   0x9   : > { %p2111_p5 = por %p102_p2, %p101_p0  ;;  %p2115_p6 = por %p108_p4, %p107_p3 }
   0xa   : > { %p1510_p7 = scmp.ge.s32.totalorder %s2044_s15, 1  ;;  %p140_p8 = scmp.lt.s32.totalorder %s2044_s15, 3 }
   0xc   : > { %p141_p9 = pnand %p1510_p7, %p140_p8 }
   0xd   : > { %p164_p10 = scmp.lt.s32.totalorder (!%p141_p9), %s2094_s16, 1  ;;  %s2047_s29 = smov (!%p141_p9), 4  }
   0xe   : > { %144 = sbr.rel (%p141_p9) target bundleno = 565 (0x235), region = 32  ;;  %s2048_s30 = smov (!%p141_p9), 8  }
   0xf   : > { %s2049_s6 = smov (!%p141_p9), 12   ;;  %s2050_s11 = smov (!%p141_p9), 24  }
  0x10   : > { %s161_s17 = sand.u32 (!%p141_p9), 1, %s2036_s13   ;;  %s1540_s26 = sshll.u32 (!%p141_p9), %s2094_s16, 12 }
  0x11   : > { %s1511_s19 = sshll.u32 (!%p141_p9), %s161_s17, 8  ;;  %s2896_s4 = scalar_lea.hbm (!%p141_p9), %s2952_s3, %s1540_s26 }
  0x13   : > { %v2046_v0 = vmov 0.0   ;;  %s165_s24 = scalar_select %p164_p10, %s2094_s16, 1  ;;  %vm235_vm0 = vcmask 1040384   ;;  %vm404_vm1 = vcmask 1046528   ;;  %vm592_vm2 = vcmask 1045504  }
  0x14   : > { %v2122_v1 = vrot.slane %v2046_v0, 7  ;;  %vm780_vm3 = vcmask 31744   ;;  %vm815_vm4 = vcmask 64512   ;;  %vm1234_vm5 = vcmask 1041408   ;;  %s2908_s16 = scalar_lea.sflag [#allocation3], %s161_s17 }
  0x15   : > { %s1539_s25 = sshll.u32 %s165_s24, 8  ;;  %vm1076_vm6 = vcmask 97280   ;;  %vm1109_vm7 = vcmask 195584   ;;  %vm1185_vm8 = vcmask 293888  }
  0x16   : > { %v2127_v2 = vsel %vm235_vm0, 0.0, %v2122_v1  ;;  %v2131_v3 = vsel %vm235_vm0, %v2122_v1, 0.0  ;;  %s2136_s28 = scalar_lea.vmem %s2949_s0, %s1539_s25  ;;  %v406_v4 = vrot.slane %v2122_v1, 1  ;;  %v594_v5 = vrot.slane %v2122_v1, 2  ;;  %s2832_s25 = scalar_lea.vmem [#allocation2], %s1511_s19 }
  0x17   : > { %v172_v6 = vld [vmem:[%s2136_s28 + $0x10] sm:$0xff]  ;;  %v173_v7 = vld [vmem:[%s2136_s28 + $0x18] sm:$0xff]  ;;  %v170_v8 = vld [vmem:[%s2136_s28] sm:$0xff]  ;;  %v405_v9 = vrot.slane %v2127_v2, 1  ;;  %v408_v10 = vrot.slane %v2131_v3, 1  ;;  %v593_v11 = vrot.slane %v2127_v2, 2 }
  0x18   : > { %v241_v12 = vrot.slane %v172_v6, 7  ;;  %v242_v13 = vrot.slane %v173_v7, 7  ;;  %v171_v14 = vld [vmem:[%s2136_s28 + $0x8] sm:$0xff]  ;;  %v238_v15 = vrot.slane %v170_v8, 7  ;;  %v188_v16 = vld [vmem:[%s2136_s28 + $0x90] sm:$0xff]  ;;  %v189_v17 = vld [vmem:[%s2136_s28 + $0x98] sm:$0xff] }
  0x19   : > { %v239_v18 = vrot.slane %v171_v14, 7  ;;  %v265_v19 = vrot.slane %v188_v16, 7  ;;  %v266_v20 = vrot.slane %v189_v17, 7  ;;  %v596_v21 = vrot.slane %v2131_v3, 2  ;;  %v186_v38 = vld [vmem:[%s2136_s28 + $0x80] sm:$0xff]  ;;  %v187_v39 = vld [vmem:[%s2136_s28 + $0x88] sm:$0xff] }
  0x1a   : > { %v2151_v22 = vsel %vm235_vm0, %v241_v12, %v242_v13  ;;  %v2154_v23 = vsel %vm235_vm0, 0.0, %v241_v12  ;;  %v2157_v24 = vsel %vm235_vm0, %v242_v13, 0.0  ;;  %v2160_v25 = vsel %vm235_vm0, 0.0, %v238_v15  ;;  %v190_v44 = vld [vmem:[%s2136_s28 + $0xa0] sm:$0xff]  ;;  %v191_v61 = vld [vmem:[%s2136_s28 + $0xa8] sm:$0xff]  ;;  %s1445_s27 = sshll.u32 %s2832_s25, 4  ;;  %s2902_s27 = int_to_ptr.vmem [resolvable:$true] %s1445_s27 }
  0x1b   : > { %v415_v26 = vrot.slane %v2154_v23, 1  ;;  %v416_v27 = vrot.slane %v2151_v22, 1  ;;  %v418_v28 = vrot.slane %v2157_v24, 1  ;;  %v606_v29 = vrot.slane %v2157_v24, 2  ;;  %s1984_s5 = scalar_lea.vmem %s2902_s27, 4096 }
  0x1c   : > { %v2167_v30 = vsel %vm235_vm0, %v238_v15, %v239_v18  ;;  %v354_v31 = vsel %vm235_vm0, %v239_v18, 0.0  ;;  %v410_v32 = vrot.slane %v2160_v25, 1  ;;  %v2172_v33 = vsel %vm235_vm0, %v265_v19, %v266_v20  ;;  %v174_v18 = vld [vmem:[%s2136_s28 + $0x20] sm:$0xff]  ;;  %p1985_p11 = scmp.ne.s32.totalorder %s2902_s27, %s1984_s5 }
  0x1d   : > { %v417_v34 = vsel %vm404_vm1, %v415_v26, %v416_v27  ;;  %v419_v35 = vsel %vm404_vm1, %v416_v27, %v418_v28  ;;  %v411_v36 = vrot.slane %v2167_v30, 1  ;;  %v413_v37 = vrot.slane %v354_v31, 1  ;;  %v175_v28 = vld [vmem:[%s2136_s28 + $0x28] sm:$0xff] }
  0x1e   : > { %v1661_v40 = vpack.i.bf16 %v419_v35, %v417_v34  ;;  %v601_v41 = vrot.slane %v354_v31, 2  ;;  %v2180_v42 = vsel %vm235_vm0, 0.0, %v265_v19  ;;  %v2183_v43 = vsel %vm235_vm0, %v266_v20, 0.0  ;;  %p1986_p12 = pnand %p1985_p11, %p2111_p5 }
  0x1f   : > { %v412_v45 = vsel %vm404_vm1, %v410_v32, %v411_v36  ;;  %v414_v46 = vsel %vm404_vm1, %v411_v36, %v413_v37  ;;  %v455_v47 = vrot.slane %v2180_v42, 1  ;;  %v456_v48 = vrot.slane %v2172_v33, 1 }
  0x20   : > { %1662 = vrot.lane.b32.xlu1 %v1661_v40, %s2047_s29  ;;  %v1651_v49 = vpack.i.bf16 %v414_v46, %v412_v45  ;;  %v458_v50 = vrot.slane %v2183_v43, 1  ;;  %v262_v51 = vrot.slane %v186_v38, 7  ;;  %v263_v52 = vrot.slane %v187_v39, 7  ;;  %p1987_p13 = pneg %p1986_p12 }
  0x21   : > { %v457_v53 = vsel %vm404_vm1, %v455_v47, %v456_v48  ;;  %v598_v54 = vrot.slane %v2160_v25, 2  ;;  %v599_v55 = vrot.slane %v2167_v30, 2  ;;  %v268_v56 = vrot.slane %v190_v44, 7 }
  0x22   : > { %1652 = vrot.lane.b32.xlu0 %v1651_v49, %s2047_s29  ;;  %v459_v57 = vsel %vm404_vm1, %v456_v48, %v458_v50  ;;  %v2198_v58 = vsel %vm235_vm0, %v262_v51, %v263_v52  ;;  %v2201_v59 = vsel %vm235_vm0, 0.0, %v262_v51  ;;  %v362_v60 = vsel %vm235_vm0, %v263_v52, 0.0 }
  0x23   : > { %v1666_v62 = vpack.i.bf16 %v459_v57, %v457_v53  ;;  %v450_v63 = vrot.slane %v2201_v59, 1  ;;  %v451_v0 = vrot.slane %v2198_v58, 1  ;;  %v453_v6 = vrot.slane %v362_v60, 1 }
  0x24   : > { %v638_v7 = vrot.slane %v2201_v59, 2  ;;  %v639_v8 = vrot.slane %v2198_v58, 2  ;;  %v641_v12 = vrot.slane %v362_v60, 2  ;;  %v600_v13 = vsel %vm592_vm2, %v598_v54, %v599_v55 }
  0x25   : > { %1667 = vrot.lane.b32.xlu1 %v1666_v62, %s2047_s29  ;;  %v452_v14 = vsel %vm404_vm1, %v450_v63, %v451_v0  ;;  %v454_v15 = vsel %vm404_vm1, %v451_v0, %v453_v6  ;;  %v602_v16 = vsel %vm592_vm2, %v599_v55, %v601_v41  ;;  %v269_v17 = vrot.slane %v191_v61, 7 }
  0x26   : > { %v1656_v19 = vpack.i.bf16 %v454_v15, %v452_v14  ;;  %v640_v20 = vsel %vm592_vm2, %v638_v7, %v639_v8  ;;  %v642_v26 = vsel %vm592_vm2, %v639_v8, %v641_v12  ;;  %v1671_v27 = vpack.i.bf16 %v602_v16, %v600_v13  ;;  %v192_v8 = vld [vmem:[%s2136_s28 + $0xb0] sm:$0xff]  ;;  %v193_v12 = vld [vmem:[%s2136_s28 + $0xb8] sm:$0xff] }
  0x27   : > { %v1676_v31 = vpack.i.bf16 %v642_v26, %v640_v20  ;;  %v2219_v32 = vsel %vm235_vm0, %v268_v56, %v269_v17  ;;  %v2222_v34 = vsel %vm235_vm0, 0.0, %v268_v56  ;;  %v364_v35 = vsel %vm235_vm0, %v269_v17, 0.0  ;;  %v176_v13 = vld [vmem:[%s2136_s28 + $0x30] sm:$0xff] }
  0x28   : > { %1657 = vrot.lane.b32.xlu0 %v1656_v19, %s2047_s29  ;;  %v460_v36 = vrot.slane %v2222_v34, 1  ;;  %v461_v37 = vrot.slane %v2219_v32, 1  ;;  %v463_v38 = vrot.slane %v364_v35, 1  ;;  %v244_v39 = vrot.slane %v174_v18, 7  ;;  %v177_v18 = vld [vmem:[%s2136_s28 + $0x38] sm:$0xff]  ;;  %v194_v19 = vld [vmem:[%s2136_s28 + $0xc0] sm:$0xff] }
  0x29   : > { %1677 = vrot.lane.b32.xlu1 %v1676_v31, %s2048_s30  ;;  %v245_v40 = vrot.slane %v175_v28, 7  ;;  %v643_v41 = vrot.slane %v2180_v42, 2  ;;  %v644_v44 = vrot.slane %v2172_v33, 2  ;;  %v646_v45 = vrot.slane %v2183_v43, 2 }
  0x2a   : > { %v462_v46 = vsel %vm404_vm1, %v460_v36, %v461_v37  ;;  %v464_v47 = vsel %vm404_vm1, %v461_v37, %v463_v38  ;;  %v2235_v48 = vsel %vm235_vm0, 0.0, %v244_v39  ;;  %v603_v49 = vrot.slane %v2154_v23, 2 }
  0x2b   : > { %v1686_v50 = vpack.i.bf16 %v464_v47, %v462_v46  ;;  %v2239_v51 = vsel %vm235_vm0, %v244_v39, %v245_v40  ;;  %v356_v52 = vsel %vm235_vm0, %v245_v40, 0.0  ;;  %v420_v53 = vrot.slane %v2235_v48, 1  ;;  %v195_v39 = vld [vmem:[%s2136_s28 + $0xc8] sm:$0xff] }
  0x2c   : > { %1672 = vrot.lane.b32.xlu0 %v1671_v27, %s2048_s30  ;;  %v421_v43 = vrot.slane %v2239_v51, 1  ;;  %v423_v54 = vrot.slane %v356_v52, 1  ;;  %v645_v55 = vsel %vm592_vm2, %v643_v41, %v644_v44  ;;  %v647_v56 = vsel %vm592_vm2, %v644_v44, %v646_v45 }
  0x2d   : > { %1687 = vrot.lane.b32.xlu1 %v1686_v50, %s2047_s29  ;;  %v1696_v57 = vpack.i.bf16 %v647_v56, %v645_v55  ;;  %v604_v60 = vrot.slane %v2151_v22, 2  ;;  %v648_v61 = vrot.slane %v2222_v34, 2  ;;  %v649_v62 = vrot.slane %v2219_v32, 2 }
  0x2e   : > { %v422_v63 = vsel %vm404_vm1, %v420_v53, %v421_v43  ;;  %v424_v0 = vsel %vm404_vm1, %v421_v43, %v423_v54  ;;  %v651_v6 = vrot.slane %v364_v35, 2  ;;  %v608_v7 = vrot.slane %v2235_v48, 2 }
  0x2f   : > { %v1681_v14 = vpack.i.bf16 %v424_v0, %v422_v63  ;;  %v605_v15 = vsel %vm592_vm2, %v603_v49, %v604_v60  ;;  %v607_v16 = vsel %vm592_vm2, %v604_v60, %v606_v29  ;;  %v650_v17 = vsel %vm592_vm2, %v648_v61, %v649_v62  ;;  %v179_v63 = vld [vmem:[%s2136_s28 + $0x48] sm:$0xff] }
  0x30   : > { %v1691_v20 = vpack.i.bf16 %v607_v16, %v605_v15  ;;  %v652_v26 = vsel %vm592_vm2, %v649_v62, %v651_v6  ;;  %v609_v27 = vrot.slane %v2239_v51, 2  ;;  %v611_v28 = vrot.slane %v356_v52, 2  ;;  %v178_v62 = vld [vmem:[%s2136_s28 + $0x40] sm:$0xff] }
  0x31   : > { %1682 = vrot.lane.b32.xlu0 %v1681_v14, %s2047_s29  ;;  %1697 = vrot.lane.b32.xlu1 %v1696_v57, %s2048_s30  ;;  %v1706_v31 = vpack.i.bf16 %v652_v26, %v650_v17  ;;  %v271_v35 = vrot.slane %v192_v8, 7  ;;  %v272_v24 = vrot.slane %v193_v12, 7  ;;  %v247_v36 = vrot.slane %v176_v13, 7 }
  0x32   : > { %v610_v29 = vsel %vm592_vm2, %v608_v7, %v609_v27  ;;  %v612_v37 = vsel %vm592_vm2, %v609_v27, %v611_v28  ;;  %v248_v38 = vrot.slane %v177_v18, 7  ;;  %v274_v40 = vrot.slane %v194_v19, 7 }
  0x33   : > { %v1701_v41 = vpack.i.bf16 %v612_v37, %v610_v29  ;;  %v2272_v44 = vsel %vm235_vm0, %v271_v35, %v272_v24  ;;  %v2275_v45 = vsel %vm235_vm0, 0.0, %v271_v35  ;;  %v365_v46 = vsel %vm235_vm0, %v272_v24, 0.0 }
  0x34   : > { %v465_v47 = vrot.slane %v2275_v45, 1  ;;  %v466_v49 = vrot.slane %v2272_v44, 1  ;;  %v468_v50 = vrot.slane %v365_v46, 1  ;;  %v2281_v52 = vsel %vm235_vm0, %v247_v36, %v248_v38 }
  0x35   : > { %1692 = vrot.lane.b32.xlu0 %v1691_v20, %s2048_s30  ;;  %1707 = vrot.lane.b32.xlu1 %v1706_v31, %s2048_s30  ;;  %v2286_v53 = vsel %vm235_vm0, 0.0, %v247_v36  ;;  %v357_v43 = vsel %vm235_vm0, %v248_v38, 0.0  ;;  %v426_v54 = vrot.slane %v2281_v52, 1  ;;  %v275_v55 = vrot.slane %v195_v39, 7 }
  0x36   : > { %v467_v56 = vsel %vm404_vm1, %v465_v47, %v466_v49  ;;  %v469_v57 = vsel %vm404_vm1, %v466_v49, %v468_v50  ;;  %v425_v60 = vrot.slane %v2286_v53, 1  ;;  %v428_v61 = vrot.slane %v357_v43, 1 }
  0x37   : > { %v1716_v0 = vpack.i.bf16 %v469_v57, %v467_v56  ;;  %v2296_v6 = vsel %vm235_vm0, %v274_v40, %v275_v55  ;;  %v2299_v7 = vsel %vm235_vm0, 0.0, %v274_v40  ;;  %v366_v8 = vsel %vm235_vm0, %v275_v55, 0.0  ;;  %v196_v56 = vld [vmem:[%s2136_s28 + $0xd0] sm:$0xff] }
  0x38   : > { %v427_v12 = vsel %vm404_vm1, %v425_v60, %v426_v54  ;;  %v429_v13 = vsel %vm404_vm1, %v426_v54, %v428_v61  ;;  %v470_v14 = vrot.slane %v2299_v7, 1  ;;  %v471_v15 = vrot.slane %v2296_v6, 1 }
  0x39   : > { %1702 = vrot.lane.b32.xlu0 %v1701_v41, %s2048_s30  ;;  %1717 = vrot.lane.b32.xlu1 %v1716_v0, %s2047_s29  ;;  %v1711_v16 = vpack.i.bf16 %v429_v13, %v427_v12  ;;  %v473_v17 = vrot.slane %v366_v8, 1  ;;  %v250_v18 = vrot.slane %v178_v62, 7  ;;  %v251_v19 = vrot.slane %v179_v63, 7  ;;  %v197_v63 = vld [vmem:[%s2136_s28 + $0xd8] sm:$0xff]  ;;  %v180_v0 = vld [vmem:[%s2136_s28 + $0x50] sm:$0xff] }
  0x3a   : > { %v472_v20 = vsel %vm404_vm1, %v470_v14, %v471_v15  ;;  %v653_v26 = vrot.slane %v2275_v45, 2  ;;  %v654_v27 = vrot.slane %v2272_v44, 2  ;;  %v656_v28 = vrot.slane %v365_v46, 2 }
  0x3b   : > { %v474_v31 = vsel %vm404_vm1, %v471_v15, %v473_v17  ;;  %v2313_v35 = vsel %vm235_vm0, %v250_v18, %v251_v19  ;;  %v2316_v24 = vsel %vm235_vm0, 0.0, %v250_v18  ;;  %v358_v36 = vsel %vm235_vm0, %v251_v19, 0.0 }
  0x3c   : > { %v1726_v29 = vpack.i.bf16 %v474_v31, %v472_v20  ;;  %v430_v37 = vrot.slane %v2316_v24, 1  ;;  %v431_v38 = vrot.slane %v2313_v35, 1  ;;  %v433_v39 = vrot.slane %v358_v36, 1 }
  0x3d   : > { %1712 = vrot.lane.b32.xlu0 %v1711_v16, %s2047_s29  ;;  %v655_v40 = vsel %vm592_vm2, %v653_v26, %v654_v27  ;;  %v657_v41 = vsel %vm592_vm2, %v654_v27, %v656_v28  ;;  %v613_v46 = vrot.slane %v2286_v53, 2  ;;  %v614_v47 = vrot.slane %v2281_v52, 2  ;;  %v181_v16 = vld [vmem:[%s2136_s28 + $0x58] sm:$0xff] }
  0x3e   : > { %1727 = vrot.lane.b32.xlu1 %v1726_v29, %s2047_s29  ;;  %v432_v49 = vsel %vm404_vm1, %v430_v37, %v431_v38  ;;  %v434_v50 = vsel %vm404_vm1, %v431_v38, %v433_v39  ;;  %v1736_v54 = vpack.i.bf16 %v657_v41, %v655_v40  ;;  %v616_v55 = vrot.slane %v357_v43, 2  ;;  %v198_v38 = vld [vmem:[%s2136_s28 + $0xe0] sm:$0xff] }
  0x3f   : > { %v1721_v57 = vpack.i.bf16 %v434_v50, %v432_v49  ;;  %v615_v60 = vsel %vm592_vm2, %v613_v46, %v614_v47  ;;  %v658_v61 = vrot.slane %v2299_v7, 2  ;;  %v659_v62 = vrot.slane %v2296_v6, 2  ;;  %v199_v46 = vld [vmem:[%s2136_s28 + $0xe8] sm:$0xff] }
  0x40   : > { %v617_v12 = vsel %vm592_vm2, %v614_v47, %v616_v55  ;;  %v661_v13 = vrot.slane %v366_v8, 2  ;;  %v618_v14 = vrot.slane %v2316_v24, 2  ;;  %v619_v15 = vrot.slane %v2313_v35, 2  ;;  %v182_v55 = vld [vmem:[%s2136_s28 + $0x60] sm:$0xff] }
  0x41   : > { %1722 = vrot.lane.b32.xlu0 %v1721_v57, %s2047_s29  ;;  %v1731_v43 = vpack.i.bf16 %v617_v12, %v615_v60  ;;  %v660_v17 = vsel %vm592_vm2, %v658_v61, %v659_v62  ;;  %v621_v18 = vrot.slane %v358_v36, 2  ;;  %v277_v19 = vrot.slane %v196_v56, 7 }
  0x42   : > { %1737 = vrot.lane.b32.xlu1 %v1736_v54, %s2048_s30  ;;  %v662_v20 = vsel %vm592_vm2, %v659_v62, %v661_v13  ;;  %v620_v8 = vsel %vm592_vm2, %v618_v14, %v619_v15  ;;  %v278_v26 = vrot.slane %v197_v63, 7  ;;  %v253_v27 = vrot.slane %v180_v0, 7  ;;  %v183_v13 = vld [vmem:[%s2136_s28 + $0x68] sm:$0xff] }
  0x43   : > { %v1746_v28 = vpack.i.bf16 %v662_v20, %v660_v17  ;;  %v622_v31 = vsel %vm592_vm2, %v619_v15, %v621_v18  ;;  %v2346_v29 = vsel %vm235_vm0, 0.0, %v277_v19  ;;  %v254_v37 = vrot.slane %v181_v16, 7 }
  0x44   : > { %v1741_v36 = vpack.i.bf16 %v622_v31, %v620_v8  ;;  %v2350_v39 = vsel %vm235_vm0, %v277_v19, %v278_v26  ;;  %v367_v40 = vsel %vm235_vm0, %v278_v26, 0.0  ;;  %v475_v41 = vrot.slane %v2346_v29, 1 }
  0x45   : > { %1732 = vrot.lane.b32.xlu0 %v1731_v43, %s2048_s30  ;;  %v476_v47 = vrot.slane %v2350_v39, 1  ;;  %v478_v49 = vrot.slane %v367_v40, 1  ;;  %v2358_v50 = vsel %vm235_vm0, %v253_v27, %v254_v37  ;;  %v2361_v54 = vsel %vm235_vm0, 0.0, %v253_v27 }
  0x46   : > { %1747 = vrot.lane.b32.xlu1 %v1746_v28, %s2048_s30  ;;  %v359_v56 = vsel %vm235_vm0, %v254_v37, 0.0  ;;  %v435_v57 = vrot.slane %v2361_v54, 1  ;;  %v436_v60 = vrot.slane %v2358_v50, 1  ;;  %v280_v61 = vrot.slane %v198_v38, 7 }
  0x47   : > { %v477_v62 = vsel %vm404_vm1, %v475_v41, %v476_v47  ;;  %v479_v63 = vsel %vm404_vm1, %v476_v47, %v478_v49  ;;  %v438_v0 = vrot.slane %v359_v56, 1  ;;  %v281_v12 = vrot.slane %v199_v46, 7 }
  0x48   : > { %v1756_v14 = vpack.i.bf16 %v479_v63, %v477_v62  ;;  %v437_v15 = vsel %vm404_vm1, %v435_v57, %v436_v60  ;;  %v2373_v16 = vsel %vm235_vm0, 0.0, %v280_v61  ;;  %v256_v43 = vrot.slane %v182_v55, 7 }
  0x49   : > { %1742 = vrot.lane.b32.xlu0 %v1741_v36, %s2048_s30  ;;  %v439_v17 = vsel %vm404_vm1, %v436_v60, %v438_v0  ;;  %v2378_v18 = vsel %vm235_vm0, %v280_v61, %v281_v12  ;;  %v368_v19 = vsel %vm235_vm0, %v281_v12, 0.0  ;;  %v480_v20 = vrot.slane %v2373_v16, 1 }
  0x4a   : > { %1757 = vrot.lane.b32.xlu1 %v1756_v14, %s2047_s29  ;;  %v1751_v8 = vpack.i.bf16 %v439_v17, %v437_v15  ;;  %v481_v26 = vrot.slane %v2378_v18, 1  ;;  %v483_v27 = vrot.slane %v368_v19, 1  ;;  %v257_v28 = vrot.slane %v183_v13, 7 }
  0x4b   : > { %v2385_v31 = vsel %vm235_vm0, 0.0, %v256_v43  ;;  %v663_v37 = vrot.slane %v2346_v29, 2  ;;  %v664_v38 = vrot.slane %v2350_v39, 2  ;;  %v666_v36 = vrot.slane %v367_v40, 2 }
  0x4c   : > { %v482_v41 = vsel %vm404_vm1, %v480_v20, %v481_v26  ;;  %v484_v46 = vsel %vm404_vm1, %v481_v26, %v483_v27  ;;  %v2392_v47 = vsel %vm235_vm0, %v256_v43, %v257_v28  ;;  %v360_v49 = vsel %vm235_vm0, %v257_v28, 0.0  ;;  %v200_v43 = vld [vmem:[%s2136_s28 + $0xf0] sm:$0xff]  ;;  %v201_v27 = vld [vmem:[%s2136_s28 + $0xf8] sm:$0xff] }
  0x4d   : > { %1752 = vrot.lane.b32.xlu0 %v1751_v8, %s2047_s29  ;;  %v1766_v55 = vpack.i.bf16 %v484_v46, %v482_v41  ;;  %v440_v57 = vrot.slane %v2385_v31, 1  ;;  %v441_v60 = vrot.slane %v2392_v47, 1  ;;  %v443_v61 = vrot.slane %v360_v49, 1  ;;  %v184_v28 = vld [vmem:[%s2136_s28 + $0x70] sm:$0xff]  ;;  %v185_v46 = vld [vmem:[%s2136_s28 + $0x78] sm:$0xff] }
  0x4e   : > { %v665_v40 = vsel %vm592_vm2, %v663_v37, %v664_v38  ;;  %v667_v62 = vsel %vm592_vm2, %v664_v38, %v666_v36  ;;  %v623_v63 = vrot.slane %v2361_v54, 2  ;;  %v624_v0 = vrot.slane %v2358_v50, 2 }
  0x4f   : > { %1767 = vrot.lane.b32.xlu1 %v1766_v55, %s2047_s29  ;;  %v442_v12 = vsel %vm404_vm1, %v440_v57, %v441_v60  ;;  %v444_v13 = vsel %vm404_vm1, %v441_v60, %v443_v61  ;;  %v1776_v14 = vpack.i.bf16 %v667_v62, %v665_v40  ;;  %v626_v15 = vrot.slane %v359_v56, 2 }
  0x50   : > { %v1761_v17 = vpack.i.bf16 %v444_v13, %v442_v12  ;;  %v625_v20 = vsel %vm592_vm2, %v623_v63, %v624_v0  ;;  %v668_v8 = vrot.slane %v2373_v16, 2  ;;  %v669_v26 = vrot.slane %v2378_v18, 2 }
  0x51   : > { %v627_v37 = vsel %vm592_vm2, %v624_v0, %v626_v15  ;;  %v671_v38 = vrot.slane %v368_v19, 2  ;;  %v628_v36 = vrot.slane %v2385_v31, 2  ;;  %v629_v41 = vrot.slane %v2392_v47, 2 }
  0x52   : > { %1762 = vrot.lane.b32.xlu0 %v1761_v17, %s2047_s29  ;;  %v1771_v56 = vpack.i.bf16 %v627_v37, %v625_v20  ;;  %v670_v55 = vsel %vm592_vm2, %v668_v8, %v669_v26  ;;  %v631_v57 = vrot.slane %v360_v49, 2  ;;  %v283_v60 = vrot.slane %v200_v43, 7 }
  0x53   : > { %1777 = vrot.lane.b32.xlu1 %v1776_v14, %s2048_s30  ;;  %v672_v61 = vsel %vm592_vm2, %v669_v26, %v671_v38  ;;  %v630_v40 = vsel %vm592_vm2, %v628_v36, %v629_v41  ;;  %v284_v62 = vrot.slane %v201_v27, 7  ;;  %v259_v19 = vrot.slane %v184_v28, 7 }
  0x54   : > { %v1786_v63 = vpack.i.bf16 %v672_v61, %v670_v55  ;;  %v632_v0 = vsel %vm592_vm2, %v629_v41, %v631_v57  ;;  %v2422_v12 = vsel %vm235_vm0, 0.0, %v283_v60  ;;  %v260_v13 = vrot.slane %v185_v46, 7 }
  0x55   : > { %v1781_v15 = vpack.i.bf16 %v632_v0, %v630_v40  ;;  %v2425_v17 = vsel %vm235_vm0, %v283_v60, %v284_v62  ;;  %v369_v49 = vsel %vm235_vm0, %v284_v62, 0.0  ;;  %v485_v14 = vrot.slane %v2422_v12, 1 }
  0x56   : > { %1772 = vrot.lane.b32.xlu0 %v1771_v56, %s2048_s30  ;;  %v486_v43 = vrot.slane %v2425_v17, 1  ;;  %v488_v20 = vrot.slane %v369_v49, 1  ;;  %v2432_v8 = vsel %vm235_vm0, %v259_v19, %v260_v13  ;;  %v2435_v26 = vsel %vm235_vm0, 0.0, %v259_v19 }
  0x57   : > { %1787 = vrot.lane.b32.xlu1 %v1786_v63, %s2048_s30  ;;  %v361_v27 = vsel %vm235_vm0, %v260_v13, 0.0  ;;  %v445_v28 = vrot.slane %v2435_v26, 1  ;;  %v446_v37 = vrot.slane %v2432_v8, 1  ;;  %v633_v38 = vrot.slane %v2435_v26, 2 }
  0x58   : > { %v487_v36 = vsel %vm404_vm1, %v485_v14, %v486_v43  ;;  %v489_v41 = vsel %vm404_vm1, %v486_v43, %v488_v20  ;;  %v448_v46 = vrot.slane %v361_v27, 1  ;;  %v634_v56 = vrot.slane %v2432_v8, 2 }
  0x59   : > { %v1796_v55 = vpack.i.bf16 %v489_v41, %v487_v36  ;;  %v447_v57 = vsel %vm404_vm1, %v445_v28, %v446_v37  ;;  %v636_v60 = vrot.slane %v361_v27, 2  ;;  %v407_v61 = vsel %vm404_vm1, %v405_v9, %v406_v4 }
  0x5a   : > { %1782 = vrot.lane.b32.xlu0 %v1781_v15, %s2048_s30  ;;  %v449_v40 = vsel %vm404_vm1, %v446_v37, %v448_v46  ;;  %v635_v62 = vsel %vm592_vm2, %v633_v38, %v634_v56  ;;  %v409_v19 = vsel %vm404_vm1, %v406_v4, %v408_v10  ;;  %v673_v63 = vrot.slane %v2422_v12, 2 }
  0x5b   : > { %1797 = vrot.lane.b32.xlu1 %v1796_v55, %s2047_s29  ;;  %v1791_v0 = vpack.i.bf16 %v449_v40, %v447_v57  ;;  %v637_v13 = vsel %vm592_vm2, %v634_v56, %v636_v60  ;;  %v674_v9 = vrot.slane %v2425_v17, 2  ;;  %v676_v15 = vrot.slane %v369_v49, 2 }
  0x5c   : > { %v1806_v14 = vpack.i.bf16 %v637_v13, %v635_v62  ;;  %v595_v43 = vsel %vm592_vm2, %v593_v11, %v594_v5  ;;  %v597_v4 = vsel %vm592_vm2, %v594_v5, %v596_v21  ;;  %v1801_v10 = vpack.i.bf16 %v409_v19, %v407_v61 }
  0x5d   : > { %v1816_v20 = vpack.i.bf16 %v597_v4, %v595_v43  ;;  %v675_v49 = vsel %vm592_vm2, %v673_v63, %v674_v9  ;;  %v677_v27 = vsel %vm592_vm2, %v674_v9, %v676_v15  ;;  %v1981_v15 = vld [vmem:[%s2950_s1 + $0x10] ss:$0 sps:$4 sm:$0x33]  }
  0x5e   : > { %1792 = vrot.lane.b32.xlu0 %v1791_v0, %s2047_s29  ;;  %v1811_v28 = vpack.i.bf16 %v677_v27, %v675_v49  ;;  %1604 = vmatprep.subr.msk.bf16.mxu0 %vm1234_vm5, %v1981_v15 }
  0x5f   : > { %1807 = vrot.lane.b32.xlu1 %v1806_v14, %s2048_s30  ;;  %1605 = vmatprep.subr.msk.bf16.mxu1 %vm1234_vm5, %v1981_v15 }
  0x62   : > { %1802 = vrot.lane.b32.xlu0 %v1801_v10, %s2047_s29 }
  0x63   : > { %1817 = vrot.lane.b32.xlu1 %v1816_v20, %s2048_s30 }
  0x66   : > { %1812 = vrot.lane.b32.xlu0 %v1811_v28, %s2048_s30  ;;  %v1982_v28 = vld [vmem:[%s2950_s1 + $0x8] sm:$0xff]  }
  0x92   : > { %v2480_v3 = vpop.permute.xlu1 %1662 }
  0x94   : > { %v1653_v5 = vpop.permute.xlu0 %1652 }
  0x95   : > { %v1655_v41 = vunpack.i.h.bf16 %v1653_v5  ;;  %v1654_v46 = vunpack.i.l.bf16 %v1653_v5  ;;  %v1665_v5 = vunpack.i.h.bf16 %v2480_v3 }
  0x97   : > { %v1668_v11 = vpop.permute.xlu1 %1667 }
  0x98   : > { %v1670_v9 = vunpack.i.h.bf16 %v1668_v11  ;;  %v1669_v14 = vunpack.i.l.bf16 %v1668_v11  ;;  %v1664_v11 = vunpack.i.l.bf16 %v2480_v3 }
  0x9a   : > { %v1658_v21 = vpop.permute.xlu0 %1657 }
  0x9b   : > { %v1660_v37 = vunpack.i.h.bf16 %v1658_v21  ;;  %v1659_v38 = vunpack.i.l.bf16 %v1658_v21  ;;  %v1678_v36 = vpop.permute.xlu1 %1677  ;;  %v802_v21 = vsel %vm780_vm3, %v2172_v33, %v1670_v9 }
  0x9c   : > { %v1680_v56 = vunpack.i.h.bf16 %v1678_v36  ;;  %v1679_v55 = vunpack.i.l.bf16 %v1678_v36 }
  0x9d   : > { %v800_v57 = vsel %vm780_vm3, %v2198_v58, %v1660_v37  ;;  %v799_v60 = vsel %vm780_vm3, %v2201_v59, %v1659_v38  ;;  %v784_v58 = vsel %vm780_vm3, %v2167_v30, %v1655_v41  ;;  %v783_v59 = vsel %vm780_vm3, %v2160_v25, %v1654_v46 }
  0x9e   : > { %v1673_v61 = vpop.permute.xlu0 %1672  ;;  %v2487_v40 = vsel %vm815_vm4, %v799_v60, %v1679_v55  ;;  %v2490_v62 = vsel %vm815_vm4, %v800_v57, %v1680_v56  ;;  %v1236_v30 = vsel %vm1234_vm5, %v1981_v15, 0  ;;  %v801_v37 = vsel %vm780_vm3, %v2180_v42, %v1669_v14 }
  0x9f   : > { %v1675_v19 = vunpack.i.h.bf16 %v1673_v61  ;;  %v1674_v63 = vunpack.i.l.bf16 %v1673_v61  ;;  %v1688_v0 = vpop.permute.xlu1 %1687  ;;  %v2494_v13 = vpack.i.bf16 %v2490_v62, %v2487_v40  ;;  %1561 = vmatpush3.bf16.msra.mxu0 %v1236_v30  ;;  %1601 = vmatpush3.bf16.msra.mxu1 %v1236_v30  ;;  %v1983_v61 = vld [vmem:[%s2950_s1] sm:$0xff]  }
  0xa0   : > { %v1690_v38 = vunpack.i.h.bf16 %v1688_v0  ;;  %v1689_v36 = vunpack.i.l.bf16 %v1688_v0  ;;  %1562 = vmatprep.subr.bf16.mxu0 %v1982_v28  ;;  %1599 = vmatprep.subr.bf16.mxu1 %v1982_v28 }
  0xa1   : > { %1827 = vrot.lane.b32.xlu1 %v2494_v13, %s2049_s6  ;;  %v2506_v43 = vsel %vm815_vm4, %v783_v59, %v1674_v63  ;;  %v2509_v4 = vsel %vm815_vm4, %v784_v58, %v1675_v19  ;;  %v786_v19 = vsel %vm780_vm3, %v2151_v22, %v1665_v5  ;;  %v785_v63 = vsel %vm780_vm3, %v2154_v23, %v1664_v11 }
  0xa2   : > { %v1821_v25 = vpack.i.bf16 %v2509_v4, %v2506_v43  ;;  %v804_v0 = vsel %vm780_vm3, %v2219_v32, %v1690_v38  ;;  %v803_v58 = vsel %vm780_vm3, %v2222_v34, %v1689_v36 }
  0xa3   : > { %v1683_v10 = vpop.permute.xlu0 %1682  ;;  %v1698_v20 = vpop.permute.xlu1 %1697  ;;  %1563 = vmatpush3.bf16.msra.mxu0 %v1982_v28  ;;  %1602 = vmatpush3.bf16.msra.mxu1 %v1982_v28 }
  0xa4   : > { %1822 = vrot.lane.b32.xlu0 %v1821_v25, %s2049_s6  ;;  %v1700_v49 = vunpack.i.h.bf16 %v1698_v20  ;;  %v1699_v27 = vunpack.i.l.bf16 %v1698_v20  ;;  %1564 = vmatprep.subr.bf16.mxu0 %v1983_v61  ;;  %v1685_v15 = vunpack.i.h.bf16 %v1683_v10  ;;  %v1684_v22 = vunpack.i.l.bf16 %v1683_v10 }
  0xa5   : > { %1600 = vmatprep.subr.bf16.mxu1 %v1983_v61 }
  0xa6   : > { %v2524_v41 = vsel %vm815_vm4, %v801_v37, %v1699_v27  ;;  %v2527_v46 = vsel %vm815_vm4, %v802_v21, %v1700_v49  ;;  %v788_v10 = vsel %vm780_vm3, %v2239_v51, %v1685_v15  ;;  %v787_v49 = vsel %vm780_vm3, %v2235_v48, %v1684_v22 }
  0xa7   : > { %v1693_v56 = vpop.permute.xlu0 %1692  ;;  %v1708_v55 = vpop.permute.xlu1 %1707  ;;  %v1836_v3 = vpack.i.bf16 %v2527_v46, %v2524_v41  ;;  %1565 = vmatpush3.bf16.msra.mxu0 %v1983_v61  ;;  %1603 = vmatpush3.bf16.msra.mxu1 %v1983_v61 }
  0xa8   : > { %v1695_v33 = vunpack.i.h.bf16 %v1693_v56  ;;  %v1694_v57 = vunpack.i.l.bf16 %v1693_v56  ;;  %v1710_v60 = vunpack.i.h.bf16 %v1708_v55  ;;  %v1709_v42 = vunpack.i.l.bf16 %v1708_v55 }
  0xa9   : > { %1837 = vrot.lane.b32.xlu1 %v1836_v3, %s2049_s6 }
  0xaa   : > { %v2544_v59 = vsel %vm815_vm4, %v785_v63, %v1694_v57  ;;  %v2547_v9 = vsel %vm815_vm4, %v786_v19, %v1695_v33  ;;  %v2552_v20 = vsel %vm815_vm4, %v803_v58, %v1709_v42  ;;  %v2555_v34 = vsel %vm815_vm4, %v804_v0, %v1710_v60 }
  0xab   : > { %v1703_v14 = vpop.permute.xlu0 %1702  ;;  %v1831_v23 = vpack.i.bf16 %v2547_v9, %v2544_v59  ;;  %v1718_v25 = vpop.permute.xlu1 %1717  ;;  %v1856_v28 = vpack.i.bf16 %v2555_v34, %v2552_v20 }
  0xac   : > { %v1705_v30 = vunpack.i.h.bf16 %v1703_v14  ;;  %v1704_v32 = vunpack.i.l.bf16 %v1703_v14  ;;  %v1720_v37 = vunpack.i.h.bf16 %v1718_v25  ;;  %v1719_v51 = vunpack.i.l.bf16 %v1718_v25 }
  0xad   : > { %1832 = vrot.lane.b32.xlu0 %v1831_v23, %s2049_s6  ;;  %1847 = vrot.lane.b32.xlu1 %v1836_v3, %s2050_s11 }
  0xae   : > { %v2566_v11 = vsel %vm815_vm4, %v787_v49, %v1704_v32  ;;  %v2569_v21 = vsel %vm815_vm4, %v788_v10, %v1705_v30  ;;  %v806_v57 = vsel %vm780_vm3, %v2272_v44, %v1720_v37  ;;  %v805_v60 = vsel %vm780_vm3, %v2275_v45, %v1719_v51 }
  0xaf   : > { %v1713_v27 = vpop.permute.xlu0 %1712  ;;  %v1851_v48 = vpack.i.bf16 %v2569_v21, %v2566_v11 }
  0xb0   : > { %v1728_v5 = vpop.permute.xlu1 %1727  ;;  %v1715_v56 = vunpack.i.h.bf16 %v1713_v27  ;;  %v1714_v55 = vunpack.i.l.bf16 %v1713_v27 }
  0xb1   : > { %1842 = vrot.lane.b32.xlu0 %v1831_v23, %s2050_s11  ;;  %1857 = vrot.lane.b32.xlu1 %v1856_v28, %s2050_s11  ;;  %v1730_v42 = vunpack.i.h.bf16 %v1728_v5  ;;  %v1729_v0 = vunpack.i.l.bf16 %v1728_v5 }
  0xb2   : > { %v790_v44 = vsel %vm780_vm3, %v2281_v52, %v1715_v56  ;;  %v789_v45 = vsel %vm780_vm3, %v2286_v53, %v1714_v55 }
  0xb3   : > { %v1723_v38 = vpop.permute.xlu0 %1722  ;;  %v808_v10 = vsel %vm780_vm3, %v2296_v6, %v1730_v42 }
  0xb4   : > { %v1738_v36 = vpop.permute.xlu1 %1737  ;;  %v1725_v49 = vunpack.i.h.bf16 %v1723_v38  ;;  %v1724_v52 = vunpack.i.l.bf16 %v1723_v38 }
  0xb5   : > { %1852 = vrot.lane.b32.xlu0 %v1851_v48, %s2050_s11  ;;  %v1740_v3 = vunpack.i.h.bf16 %v1738_v36  ;;  %v1739_v33 = vunpack.i.l.bf16 %v1738_v36  ;;  %1867 = vrot.lane.b32.xlu1 %v1856_v28, %s2049_s6  ;;  %v807_v28 = vsel %vm780_vm3, %v2299_v7, %v1729_v0 }
  0xb6   : > { %v792_v6 = vsel %vm780_vm3, %v2313_v35, %v1725_v49  ;;  %v791_v38 = vsel %vm780_vm3, %v2316_v24, %v1724_v52 }
  0xb7   : > { %v1733_v61 = vpop.permute.xlu0 %1732  ;;  %v2582_v19 = vsel %vm815_vm4, %v805_v60, %v1739_v33  ;;  %v2585_v63 = vsel %vm815_vm4, %v806_v57, %v1740_v3 }
  0xb8   : > { %v1735_v58 = vunpack.i.h.bf16 %v1733_v61  ;;  %v1734_v15 = vunpack.i.l.bf16 %v1733_v61  ;;  %v1748_v22 = vpop.permute.xlu1 %1747  ;;  %v1876_v14 = vpack.i.bf16 %v2585_v63, %v2582_v19 }
  0xb9   : > { %1862 = vrot.lane.b32.xlu0 %v1851_v48, %s2049_s6  ;;  %v1750_v23 = vunpack.i.h.bf16 %v1748_v22  ;;  %v1749_v25 = vunpack.i.l.bf16 %v1748_v22 }
  0xba   : > { %1877 = vrot.lane.b32.xlu1 %v1876_v14, %s2049_s6  ;;  %v2596_v30 = vsel %vm815_vm4, %v789_v45, %v1734_v15  ;;  %v2599_v32 = vsel %vm815_vm4, %v790_v44, %v1735_v58 }
  0xbb   : > { %v1743_v27 = vpop.permute.xlu0 %1742  ;;  %v1871_v53 = vpack.i.bf16 %v2599_v32, %v2596_v30  ;;  %v2609_v48 = vsel %vm815_vm4, %v807_v28, %v1749_v25  ;;  %v2612_v36 = vsel %vm815_vm4, %v808_v10, %v1750_v23 }
  0xbc   : > { %v1745_v5 = vunpack.i.h.bf16 %v1743_v27  ;;  %v1744_v37 = vunpack.i.l.bf16 %v1743_v27  ;;  %v1758_v51 = vpop.permute.xlu1 %1757  ;;  %v1896_v56 = vpack.i.bf16 %v2612_v36, %v2609_v48 }
  0xbd   : > { %1872 = vrot.lane.b32.xlu0 %v1871_v53, %s2049_s6  ;;  %v1760_v57 = vunpack.i.h.bf16 %v1758_v51  ;;  %v1759_v35 = vunpack.i.l.bf16 %v1758_v51 }
  0xbe   : > { %1887 = vrot.lane.b32.xlu1 %v1876_v14, %s2050_s11  ;;  %v2622_v55 = vsel %vm815_vm4, %v791_v38, %v1744_v37  ;;  %v2625_v3 = vsel %vm815_vm4, %v792_v6, %v1745_v5 }
  0xbf   : > { %v1753_v7 = vpop.permute.xlu0 %1752  ;;  %v1891_v24 = vpack.i.bf16 %v2625_v3, %v2622_v55  ;;  %v810_v22 = vsel %vm780_vm3, %v2350_v39, %v1760_v57  ;;  %v809_v14 = vsel %vm780_vm3, %v2346_v29, %v1759_v35 }
  0xc0   : > { %v1755_v61 = vunpack.i.h.bf16 %v1753_v7  ;;  %v1754_v0 = vunpack.i.l.bf16 %v1753_v7 }
  0xc1   : > { %1882 = vrot.lane.b32.xlu0 %v1871_v53, %s2050_s11  ;;  %v1768_v33 = vpop.permute.xlu1 %1767 }
  0xc2   : > { %1897 = vrot.lane.b32.xlu1 %v1896_v56, %s2050_s11  ;;  %v1770_v44 = vunpack.i.h.bf16 %v1768_v33  ;;  %v1769_v10 = vunpack.i.l.bf16 %v1768_v33  ;;  %v794_v29 = vsel %vm780_vm3, %v2358_v50, %v1755_v61  ;;  %v793_v53 = vsel %vm780_vm3, %v2361_v54, %v1754_v0 }
  0xc4   : > { %v1763_v60 = vpop.permute.xlu0 %1762  ;;  %v812_v6 = vsel %vm780_vm3, %v2378_v18, %v1770_v44  ;;  %v811_v54 = vsel %vm780_vm3, %v2373_v16, %v1769_v10 }
  0xc5   : > { %1892 = vrot.lane.b32.xlu0 %v1891_v24, %s2050_s11  ;;  %v1778_v42 = vpop.permute.xlu1 %1777  ;;  %v1765_v38 = vunpack.i.h.bf16 %v1763_v60  ;;  %v1764_v7 = vunpack.i.l.bf16 %v1763_v60 }
  0xc6   : > { %v1780_v58 = vunpack.i.h.bf16 %v1778_v42  ;;  %v1779_v15 = vunpack.i.l.bf16 %v1778_v42  ;;  %1907 = vrot.lane.b32.xlu1 %v1896_v56, %s2049_s6 }
  0xc7   : > { %v796_v18 = vsel %vm780_vm3, %v2392_v47, %v1765_v38  ;;  %v795_v60 = vsel %vm780_vm3, %v2385_v31, %v1764_v7 }
  0xc8   : > { %v1773_v45 = vpop.permute.xlu0 %1772  ;;  %v2638_v23 = vsel %vm815_vm4, %v809_v14, %v1779_v15  ;;  %v2641_v25 = vsel %vm815_vm4, %v810_v22, %v1780_v58 }
  0xc9   : > { %v1775_v49 = vunpack.i.h.bf16 %v1773_v45  ;;  %v1774_v52 = vunpack.i.l.bf16 %v1773_v45  ;;  %1902 = vrot.lane.b32.xlu0 %v1891_v24, %s2049_s6  ;;  %v1788_v27 = vpop.permute.xlu1 %1787  ;;  %v1916_v39 = vpack.i.bf16 %v2641_v25, %v2638_v23 }
  0xca   : > { %v1790_v28 = vunpack.i.h.bf16 %v1788_v27  ;;  %v1789_v5 = vunpack.i.l.bf16 %v1788_v27 }
  0xcb   : > { %1917 = vrot.lane.b32.xlu1 %v1916_v39, %s2049_s6  ;;  %v2652_v37 = vsel %vm815_vm4, %v793_v53, %v1774_v52  ;;  %v2655_v51 = vsel %vm815_vm4, %v794_v29, %v1775_v49 }
  0xcc   : > { %v1783_v56 = vpop.permute.xlu0 %1782  ;;  %v1911_v50 = vpack.i.bf16 %v2655_v51, %v2652_v37  ;;  %v2665_v24 = vsel %vm815_vm4, %v811_v54, %v1789_v5  ;;  %v2668_v42 = vsel %vm815_vm4, %v812_v6, %v1790_v28 }
  0xcd   : > { %v1785_v33 = vunpack.i.h.bf16 %v1783_v56  ;;  %v1784_v57 = vunpack.i.l.bf16 %v1783_v56  ;;  %v1798_v35 = vpop.permute.xlu1 %1797  ;;  %v1936_v61 = vpack.i.bf16 %v2668_v42, %v2665_v24 }
  0xce   : > { %1912 = vrot.lane.b32.xlu0 %v1911_v50, %s2049_s6  ;;  %v1800_v10 = vunpack.i.h.bf16 %v1798_v35  ;;  %v1799_v49 = vunpack.i.l.bf16 %v1798_v35 }
  0xcf   : > { %1927 = vrot.lane.b32.xlu1 %v1916_v39, %s2050_s11  ;;  %v2678_v0 = vsel %vm815_vm4, %v795_v60, %v1784_v57  ;;  %v2681_v58 = vsel %vm815_vm4, %v796_v18, %v1785_v33 }
  0xd0   : > { %v1793_v16 = vpop.permute.xlu0 %1792  ;;  %v1931_v31 = vpack.i.bf16 %v2681_v58, %v2678_v0  ;;  %v814_v6 = vsel %vm780_vm3, %v2425_v17, %v1800_v10  ;;  %v813_v38 = vsel %vm780_vm3, %v2422_v12, %v1799_v49 }
  0xd1   : > { %v1808_v15 = vpop.permute.xlu1 %1807  ;;  %v1795_v22 = vunpack.i.h.bf16 %v1793_v16  ;;  %v1794_v47 = vunpack.i.l.bf16 %v1793_v16 }
  0xd2   : > { %1922 = vrot.lane.b32.xlu0 %v1911_v50, %s2050_s11  ;;  %v1810_v44 = vunpack.i.h.bf16 %v1808_v15  ;;  %v1809_v45 = vunpack.i.l.bf16 %v1808_v15 }
  0xd3   : > { %1937 = vrot.lane.b32.xlu1 %v1936_v61, %s2050_s11  ;;  %v798_v52 = vsel %vm780_vm3, %v2432_v8, %v1795_v22  ;;  %v797_v27 = vsel %vm780_vm3, %v2435_v26, %v1794_v47 }
  0xd4   : > { %v1803_v14 = vpop.permute.xlu0 %1802  ;;  %v832_v28 = vsel %vm815_vm4, %v797_v27, %v1809_v45  ;;  %v833_v5 = vsel %vm815_vm4, %v798_v52, %v1810_v44 }
  0xd5   : > { %v1818_v7 = vpop.permute.xlu1 %1817  ;;  %v1805_v56 = vunpack.i.h.bf16 %v1803_v14  ;;  %v1804_v50 = vunpack.i.l.bf16 %v1803_v14  ;;  %v1951_v33 = vpack.i.bf16 %v833_v5, %v832_v28 }
  0xd6   : > { %1932 = vrot.lane.b32.xlu0 %v1931_v31, %s2050_s11  ;;  %v1820_v57 = vunpack.i.h.bf16 %v1818_v7  ;;  %v1819_v35 = vunpack.i.l.bf16 %v1818_v7 }
  0xd7   : > { %1947 = vrot.lane.b32.xlu1 %v1936_v61, %s2049_s6  ;;  %v782_v12 = vsel %vm780_vm3, %v2122_v1, %v1805_v56  ;;  %v781_v17 = vsel %vm780_vm3, %v2127_v2, %v1804_v50 }
  0xd8   : > { %v1813_v39 = vpop.permute.xlu0 %1812  ;;  %v816_v18 = vsel %vm815_vm4, %v781_v17, %v1819_v35  ;;  %v817_v60 = vsel %vm815_vm4, %v782_v12, %v1820_v57 }
  0xd9   : > { %v1815_v29 = vunpack.i.h.bf16 %v1813_v39  ;;  %v1814_v53 = vunpack.i.l.bf16 %v1813_v39  ;;  %v1976_v16 = vpack.i.bf16 %v817_v60, %v816_v18 }
  0xda   : > { %1942 = vrot.lane.b32.xlu0 %v1931_v31, %s2049_s6 }
  0xdb   : > { %v848_v8 = vsel %vm815_vm4, %v813_v38, %v1814_v53  ;;  %v849_v26 = vsel %vm815_vm4, %v814_v6, %v1815_v29 }
  0xdc   : > { %v1956_v54 = vpack.i.bf16 %v849_v26, %v848_v8 }
  0xde   : > { %1957 = vrot.lane.b32.xlu1 %v1956_v54, %s2049_s6  ;;  %1952 = vrot.lane.b32.xlu0 %v1951_v33, %s2049_s6  ;;  %s2051_s6 = smov [#allocation2]  }
  0xdf   : > { %s1988_s7 = sshll.u32 %s2051_s6, 4  ;;  %s1989_s7 = int_to_ptr.vmem [resolvable:$false] %s1988_s7 }
  0xe0   : > { %s1990_s8 = scalar_lea.vmem %s1989_s7, 8192  ;;  %p1991_p0 = scmp.lt.s32.totalorder %s2902_s27, %s1989_s7 }
  0xe1   : > { %p1992_p1 = scmp.lt.s32.totalorder %s1990_s8, %s1984_s5 }
  0xe2   : > { %1967 = vrot.lane.b32.xlu1 %v1956_v54, %s2050_s11  ;;  %1962 = vrot.lane.b32.xlu0 %v1951_v33, %s2050_s11 }
  0xe3   : > { %p1993_p2 = por %p1992_p1, %p1991_p0 }
  0xe5   : > { %p1994_p3 = pnand %p1993_p2, %p1987_p13 }
  0xe6   : > { %1977 = vrot.lane.b32.xlu1 %v1976_v16, %s2050_s11  ;;  %1972 = vrot.lane.b32.xlu0 %v2494_v13, %s2050_s11 }
 0x113   : > { %v1828_v61 = vpop.permute.xlu1 %1827 }
 0x114   : > { %v1830_v22 = vunpack.i.h.bf16 %v1828_v61  ;;  %v1829_v47 = vunpack.i.l.bf16 %v1828_v61 }
 0x116   : > { %v1823_v15 = vpop.permute.xlu0 %1822  ;;  %v1093_v27 = vsel %vm1076_vm6, %v832_v28, %v1829_v47  ;;  %v1094_v39 = vsel %vm1076_vm6, %v833_v5, %v1830_v22 }
 0x117   : > { %v1825_v2 = vunpack.i.h.bf16 %v1823_v15  ;;  %v1824_v14 = vunpack.i.l.bf16 %v1823_v15 }
 0x119   : > { %v1077_v38 = vsel %vm1076_vm6, %v816_v18, %v1824_v14  ;;  %v1078_v7 = vsel %vm1076_vm6, %v817_v60, %v1825_v2 }
 0x11b   : > { %v1838_v1 = vpop.permute.xlu1 %1837 }
 0x11c   : > { %v1840_v49 = vunpack.i.h.bf16 %v1838_v1  ;;  %v1839_v52 = vunpack.i.l.bf16 %v1838_v1 }
 0x11e   : > { %v1096_v28 = vsel %vm1076_vm6, %v2490_v62, %v1840_v49  ;;  %v1095_v5 = vsel %vm1076_vm6, %v2487_v40, %v1839_v52 }
 0x11f   : > { %v1833_v31 = vpop.permute.xlu0 %1832  ;;  %v1848_v44 = vpop.permute.xlu1 %1847 }
 0x120   : > { %v1850_v45 = vunpack.i.h.bf16 %v1848_v44  ;;  %v1849_v10 = vunpack.i.l.bf16 %v1848_v44  ;;  %v1835_v33 = vunpack.i.h.bf16 %v1833_v31  ;;  %v1834_v57 = vunpack.i.l.bf16 %v1833_v31 }
 0x122   : > { %v1126_v13 = vsel %vm1109_vm7, %v1093_v27, %v1849_v10  ;;  %v1127_v29 = vsel %vm1109_vm7, %v1094_v39, %v1850_v45  ;;  %v1080_v40 = vsel %vm1076_vm6, %v2509_v4, %v1835_v33  ;;  %v1079_v22 = vsel %vm1076_vm6, %v2506_v43, %v1834_v57 }
 0x123   : > { %v1843_v53 = vpop.permute.xlu0 %1842  ;;  %v1858_v6 = vpop.permute.xlu1 %1857  ;;  %v1150_v8 = vpack.c.bf16 %v1127_v29, %v1126_v13 }
 0x124   : > { %v1845_v26 = vunpack.i.h.bf16 %v1843_v53  ;;  %v1844_v56 = vunpack.i.l.bf16 %v1843_v53  ;;  %v1860_v50 = vunpack.i.h.bf16 %v1858_v6  ;;  %v1859_v54 = vunpack.i.l.bf16 %v1858_v6 }
 0x125   : > { %1582 = vmatprep.mubr.msk.bf16.mxu1 %vm1185_vm8, %v1150_v8 }
 0x126   : > { %v1128_v35 = vsel %vm1109_vm7, %v1095_v5, %v1859_v54  ;;  %v1129_v12 = vsel %vm1109_vm7, %v1096_v28, %v1860_v50  ;;  %v1110_v17 = vsel %vm1109_vm7, %v1077_v38, %v1844_v56  ;;  %v1111_v18 = vsel %vm1109_vm7, %v1078_v7, %v1845_v26 }
 0x127   : > { %v1151_v60 = vpack.c.bf16 %v1129_v12, %v1128_v35  ;;  %v1853_v16 = vpop.permute.xlu0 %1852  ;;  %v1142_v61 = vpack.c.bf16 %v1111_v18, %v1110_v17  ;;  %v1868_v15 = vpop.permute.xlu1 %1867 }
 0x128   : > { %v1855_v62 = vunpack.i.h.bf16 %v1853_v16  ;;  %v1854_v1 = vunpack.i.l.bf16 %v1853_v16  ;;  %v1870_v45 = vunpack.i.h.bf16 %v1868_v15  ;;  %v1869_v10 = vunpack.i.l.bf16 %v1868_v15 }
 0x129   : > { %1566 = vmatprep.mubr.msk.bf16.mxu0 %vm1185_vm8, %v1142_v61  ;;  %1583 = vmatmul.mubr.msk.bf16.vlgmr.msra.gmra.mxu1 %vm1185_vm8, %v1151_v60 }
 0x12a   : > { %v1112_v47 = vsel %vm1109_vm7, %v1079_v22, %v1854_v1  ;;  %v1113_v2 = vsel %vm1109_vm7, %v1080_v40, %v1855_v62  ;;  %v1098_v13 = vsel %vm1076_vm6, %v2527_v46, %v1870_v45  ;;  %v1097_v29 = vsel %vm1076_vm6, %v2524_v41, %v1869_v10 }
 0x12b   : > { %v1143_v14 = vpack.c.bf16 %v1113_v2, %v1112_v47  ;;  %v1863_v31 = vpop.permute.xlu0 %1862 }
 0x12c   : > { %v1878_v44 = vpop.permute.xlu1 %1877  ;;  %v1865_v49 = vunpack.i.h.bf16 %v1863_v31  ;;  %v1864_v52 = vunpack.i.l.bf16 %v1863_v31 }
 0x12d   : > { %1567 = vmatmul.mubr.msk.bf16.vlgmr.msra.gmra.mxu0 %vm1185_vm8, %v1143_v14  ;;  %v1880_v53 = vunpack.i.h.bf16 %v1878_v44  ;;  %v1879_v6 = vunpack.i.l.bf16 %v1878_v44 }
 0x12e   : > { %v1082_v38 = vsel %vm1076_vm6, %v2547_v9, %v1865_v49  ;;  %v1081_v56 = vsel %vm1076_vm6, %v2544_v59, %v1864_v52 }
 0x12f   : > { %v1873_v4 = vpop.permute.xlu0 %1872  ;;  %v1100_v35 = vsel %vm1076_vm6, %v2555_v34, %v1880_v53  ;;  %v1099_v9 = vsel %vm1076_vm6, %v2552_v20, %v1879_v6 }
 0x130   : > { %v1888_v27 = vpop.permute.xlu1 %1887  ;;  %v1875_v5 = vunpack.i.h.bf16 %v1873_v4  ;;  %v1874_v33 = vunpack.i.l.bf16 %v1873_v4 }
 0x131   : > { %v1890_v43 = vunpack.i.h.bf16 %v1888_v27  ;;  %v1889_v39 = vunpack.i.l.bf16 %v1888_v27 }
 0x132   : > { %v1084_v34 = vsel %vm1076_vm6, %v2569_v21, %v1875_v5  ;;  %v1083_v20 = vsel %vm1076_vm6, %v2566_v11, %v1874_v33 }
 0x133   : > { %v1130_v7 = vsel %vm1109_vm7, %v1097_v29, %v1889_v39  ;;  %v1131_v8 = vsel %vm1109_vm7, %v1098_v13, %v1890_v43  ;;  %v1883_v26 = vpop.permute.xlu0 %1882 }
 0x134   : > { %v1152_v50 = vpack.c.bf16 %v1131_v8, %v1130_v7  ;;  %v1885_v54 = vunpack.i.h.bf16 %v1883_v26  ;;  %v1884_v28 = vunpack.i.l.bf16 %v1883_v26  ;;  %v1898_v46 = vpop.permute.xlu1 %1897 }
 0x135   : > { %v1900_v41 = vunpack.i.h.bf16 %v1898_v46  ;;  %v1899_v57 = vunpack.i.l.bf16 %v1898_v46 }
 0x136   : > { %v1114_v12 = vsel %vm1109_vm7, %v1081_v56, %v1884_v28  ;;  %v1115_v17 = vsel %vm1109_vm7, %v1082_v38, %v1885_v54  ;;  %1586 = vmatprep.mubr.msk.bf16.mxu1 %vm1185_vm8, %v1152_v50 }
 0x137   : > { %v1144_v59 = vpack.c.bf16 %v1115_v17, %v1114_v12  ;;  %v1132_v18 = vsel %vm1109_vm7, %v1099_v9, %v1899_v57  ;;  %v1133_v60 = vsel %vm1109_vm7, %v1100_v35, %v1900_v41  ;;  %v1893_v16 = vpop.permute.xlu0 %1892 }
 0x138   : > { %v1153_v61 = vpack.c.bf16 %v1133_v60, %v1132_v18  ;;  %v1895_v15 = vunpack.i.h.bf16 %v1893_v16  ;;  %v1894_v62 = vunpack.i.l.bf16 %v1893_v16  ;;  %v1908_v1 = vpop.permute.xlu1 %1907 }
 0x139   : > { %1570 = vmatprep.mubr.msk.bf16.mxu0 %vm1185_vm8, %v1144_v59  ;;  %v1910_v31 = vunpack.i.h.bf16 %v1908_v1  ;;  %v1909_v44 = vunpack.i.l.bf16 %v1908_v1 }
 0x13a   : > { %v1116_v40 = vsel %vm1109_vm7, %v1083_v20, %v1894_v62  ;;  %v1117_v22 = vsel %vm1109_vm7, %v1084_v34, %v1895_v15  ;;  %1587 = vmatmul.mubr.msk.bf16.gmra.mxu1 %vm1185_vm8, %v1153_v61 }
 0x13b   : > { %v1145_v47 = vpack.c.bf16 %v1117_v22, %v1116_v40  ;;  %v1903_v2 = vpop.permute.xlu0 %1902  ;;  %v1102_v52 = vsel %vm1076_vm6, %v2585_v63, %v1910_v31  ;;  %v1101_v27 = vsel %vm1076_vm6, %v2582_v19, %v1909_v44 }
 0x13c   : > { %v1905_v45 = vunpack.i.h.bf16 %v1903_v2  ;;  %v1904_v10 = vunpack.i.l.bf16 %v1903_v2 }
 0x13d   : > { %1571 = vmatmul.mubr.msk.bf16.gmra.mxu0 %vm1185_vm8, %v1145_v47  ;;  %v1918_v14 = vpop.permute.xlu1 %1917 }
 0x13e   : > { %v1920_v43 = vunpack.i.h.bf16 %v1918_v14  ;;  %v1919_v39 = vunpack.i.l.bf16 %v1918_v14  ;;  %v1086_v13 = vsel %vm1076_vm6, %v2599_v32, %v1905_v45  ;;  %v1085_v38 = vsel %vm1076_vm6, %v2596_v30, %v1904_v10 }
 0x140   : > { %v1913_v21 = vpop.permute.xlu0 %1912  ;;  %v1104_v28 = vsel %vm1076_vm6, %v2612_v36, %v1920_v43  ;;  %v1103_v32 = vsel %vm1076_vm6, %v2609_v48, %v1919_v39 }
 0x141   : > { %v1928_v49 = vpop.permute.xlu1 %1927  ;;  %v1915_v56 = vunpack.i.h.bf16 %v1913_v21  ;;  %v1914_v50 = vunpack.i.l.bf16 %v1913_v21 }
 0x142   : > { %v1930_v11 = vunpack.i.h.bf16 %v1928_v49  ;;  %v1929_v4 = vunpack.i.l.bf16 %v1928_v49 }
 0x143   : > { %v1088_v36 = vsel %vm1076_vm6, %v2625_v3, %v1915_v56  ;;  %v1087_v48 = vsel %vm1076_vm6, %v2622_v55, %v1914_v50 }
 0x144   : > { %v1134_v29 = vsel %vm1109_vm7, %v1101_v27, %v1929_v4  ;;  %v1135_v53 = vsel %vm1109_vm7, %v1102_v52, %v1930_v11  ;;  %v1923_v6 = vpop.permute.xlu0 %1922 }
 0x145   : > { %v1154_v7 = vpack.c.bf16 %v1135_v53, %v1134_v29  ;;  %v1925_v8 = vunpack.i.h.bf16 %v1923_v6  ;;  %v1924_v26 = vunpack.i.l.bf16 %v1923_v6  ;;  %v1938_v63 = vpop.permute.xlu1 %1937 }
 0x146   : > { %v1940_v19 = vunpack.i.h.bf16 %v1938_v63  ;;  %v1939_v54 = vunpack.i.l.bf16 %v1938_v63 }
 0x147   : > { %v1118_v46 = vsel %vm1109_vm7, %v1085_v38, %v1924_v26  ;;  %v1119_v5 = vsel %vm1109_vm7, %v1086_v13, %v1925_v8  ;;  %1590 = vmatprep.mubr.msk.bf16.mxu1 %vm1185_vm8, %v1154_v7 }
 0x148   : > { %v1146_v30 = vpack.c.bf16 %v1119_v5, %v1118_v46  ;;  %v1136_v33 = vsel %vm1109_vm7, %v1103_v32, %v1939_v54  ;;  %v1137_v41 = vsel %vm1109_vm7, %v1104_v28, %v1940_v19  ;;  %v1933_v57 = vpop.permute.xlu0 %1932 }
 0x149   : > { %v1155_v35 = vpack.c.bf16 %v1137_v41, %v1136_v33  ;;  %v1935_v9 = vunpack.i.h.bf16 %v1933_v57  ;;  %v1934_v12 = vunpack.i.l.bf16 %v1933_v57  ;;  %v1948_v17 = vpop.permute.xlu1 %1947 }
 0x14a   : > { %1574 = vmatprep.mubr.msk.bf16.mxu0 %vm1185_vm8, %v1146_v30  ;;  %v1950_v61 = vunpack.i.h.bf16 %v1948_v17  ;;  %v1949_v15 = vunpack.i.l.bf16 %v1948_v17 }
 0x14b   : > { %v1120_v59 = vsel %vm1109_vm7, %v1087_v48, %v1934_v12  ;;  %v1121_v18 = vsel %vm1109_vm7, %v1088_v36, %v1935_v9  ;;  %1591 = vmatmul.mubr.msk.bf16.gmra.mxu1 %vm1185_vm8, %v1155_v35 }
 0x14c   : > { %v1147_v60 = vpack.c.bf16 %v1121_v18, %v1120_v59  ;;  %v1943_v16 = vpop.permute.xlu0 %1942  ;;  %v1106_v55 = vsel %vm1076_vm6, %v2641_v25, %v1950_v61  ;;  %v1105_v20 = vsel %vm1076_vm6, %v2638_v23, %v1949_v15 }
 0x14d   : > { %v1945_v62 = vunpack.i.h.bf16 %v1943_v16  ;;  %v1944_v34 = vunpack.i.l.bf16 %v1943_v16 }
 0x14e   : > { %1575 = vmatmul.mubr.msk.bf16.gmra.mxu0 %vm1185_vm8, %v1147_v60 }
 0x14f   : > { %v1090_v40 = vsel %vm1076_vm6, %v2655_v51, %v1945_v62  ;;  %v1089_v21 = vsel %vm1076_vm6, %v2652_v37, %v1944_v34 }
 0x150   : > { %v1958_v3 = vpop.permute.xlu1 %1957  ;;  %v1953_v1 = vpop.permute.xlu0 %1952 }
 0x151   : > { %v1960_v22 = vunpack.i.h.bf16 %v1958_v3  ;;  %v1959_v10 = vunpack.i.l.bf16 %v1958_v3  ;;  %v1955_v49 = vunpack.i.h.bf16 %v1953_v1  ;;  %v1954_v11 = vunpack.i.l.bf16 %v1953_v1 }
 0x153   : > { %v1108_v52 = vsel %vm1076_vm6, %v2668_v42, %v1960_v22  ;;  %v1107_v38 = vsel %vm1076_vm6, %v2665_v24, %v1959_v10  ;;  %v1092_v7 = vsel %vm1076_vm6, %v2681_v58, %v1955_v49  ;;  %v1091_v8 = vsel %vm1076_vm6, %v2678_v0, %v1954_v11  ;;  %v2829_v0 = vld [vmem:[%s2951_s2] ss:$0 sm:$0xff] }
 0x154   : > { %v1968_v47 = vpop.permute.xlu1 %1967  ;;  %v1963_v2 = vpop.permute.xlu0 %1962 }
 0x155   : > { %v1970_v14 = vunpack.i.h.bf16 %v1968_v47  ;;  %v1969_v31 = vunpack.i.l.bf16 %v1968_v47  ;;  %v1965_v44 = vunpack.i.h.bf16 %v1963_v2  ;;  %v1964_v45 = vunpack.i.l.bf16 %v1963_v2 }
 0x157   : > { %v1138_v25 = vsel %vm1109_vm7, %v1105_v20, %v1969_v31  ;;  %v1139_v23 = vsel %vm1109_vm7, %v1106_v55, %v1970_v14  ;;  %v1122_v4 = vsel %vm1109_vm7, %v1089_v21, %v1964_v45  ;;  %v1123_v51 = vsel %vm1109_vm7, %v1090_v40, %v1965_v44 }
 0x158   : > { %v1156_v27 = vpack.c.bf16 %v1139_v23, %v1138_v25  ;;  %v1148_v43 = vpack.c.bf16 %v1123_v51, %v1122_v4  ;;  %v1978_v39 = vpop.permute.xlu1 %1977  ;;  %v1973_v13 = vpop.permute.xlu0 %1972 }
 0x159   : > { %v1980_v29 = vunpack.i.h.bf16 %v1978_v39  ;;  %v1979_v37 = vunpack.i.l.bf16 %v1978_v39  ;;  %v1975_v53 = vunpack.i.h.bf16 %v1973_v13  ;;  %v1974_v6 = vunpack.i.l.bf16 %v1973_v13 }
 0x15a   : > { %1578 = vmatprep.mubr.msk.bf16.mxu0 %vm1185_vm8, %v1148_v43  ;;  %1594 = vmatprep.mubr.msk.bf16.mxu1 %vm1185_vm8, %v1156_v27 }
 0x15b   : > { %v1140_v42 = vsel %vm1109_vm7, %v1107_v38, %v1979_v37  ;;  %v1141_v26 = vsel %vm1109_vm7, %v1108_v52, %v1980_v29  ;;  %v1124_v63 = vsel %vm1109_vm7, %v1091_v8, %v1974_v6  ;;  %v1125_v56 = vsel %vm1109_vm7, %v1092_v7, %v1975_v53 }
 0x15c   : > { %v1157_v50 = vpack.c.bf16 %v1141_v26, %v1140_v42  ;;  %v1149_v24 = vpack.c.bf16 %v1125_v56, %v1124_v63 }
 0x15e   : > { %1579 = vmatmul.mubr.msk.bf16.gmra.mxu0 %vm1185_vm8, %v1149_v24  ;;  %1595 = vmatmul.mubr.msk.bf16.gmra.mxu1 %vm1185_vm8, %v1157_v50 }
 0x1e9   : > { %v1584_v58 = vpop.f32.mrf.mxu1 }
 0x1ea   : > { %v1345_v19 = vadd.f32 %v1584_v58, %v2829_v0 }
 0x1eb   : > { %v1336_v54 = vpop.f32.mrf.mxu1 }
 0x1ec   : > { %1417 = vst [vmem:[%s2832_s25 + $0x90] sm:$0xff] %v1345_v19  ;;  %v1337_v28 = vadd.f32 %v2829_v0, %v1336_v54 }
 0x1ed   : > { %v1568_v32 = vpop.f32.mrf.mxu0  ;;  %v1585_v46 = vpop.f32.mrf.mxu1 }
 0x1ee   : > { %v1281_v5 = vadd.f32 %v1568_v32, %v2829_v0  ;;  %1415 = vst [vmem:[%s2832_s25 + $0x80] sm:$0xff] %v1337_v28  ;;  %v1348_v30 = vadd.f32 %v1585_v46, %v2829_v0 }
 0x1ef   : > { %v1272_v33 = vpop.f32.mrf.mxu0  ;;  %v1339_v41 = vpop.f32.mrf.mxu1 }
 0x1f0   : > { %1401 = vst [vmem:[%s2832_s25 + $0x10] sm:$0xff] %v1281_v5  ;;  %v1273_v57 = vadd.f32 %v2829_v0, %v1272_v33  ;;  %1418 = vst [vmem:[%s2832_s25 + $0x98] sm:$0xff] %v1348_v30  ;;  %v1340_v35 = vadd.f32 %v2829_v0, %v1339_v41 }
 0x1f1   : > { %v1569_v9 = vpop.f32.mrf.mxu0 }
 0x1f2   : > { %1399 = vst [vmem:[%s2832_s25] sm:$0xff] %v1273_v57  ;;  %v1284_v12 = vadd.f32 %v1569_v9, %v2829_v0  ;;  %1416 = vst [vmem:[%s2832_s25 + $0x88] sm:$0xff] %v1340_v35 }
 0x1f3   : > { %v1275_v36 = vpop.f32.mrf.mxu0 }
 0x1f4   : > { %1402 = vst [vmem:[%s2832_s25 + $0x18] sm:$0xff] %v1284_v12  ;;  %v1276_v48 = vadd.f32 %v2829_v0, %v1275_v36 }
 0x1f6   : > { %1400 = vst [vmem:[%s2832_s25 + $0x8] sm:$0xff] %v1276_v48 }
 0x1fa   : > { %v1588_v17 = vpop.f32.mrf.mxu1 }
 0x1fb   : > { %v1361_v59 = vadd.f32 %v1588_v17, %v2829_v0 }
 0x1fc   : > { %v1352_v18 = vpop.f32.mrf.mxu1 }
 0x1fd   : > { %v1572_v60 = vpop.f32.mrf.mxu0  ;;  %1421 = vst [vmem:[%s2832_s25 + $0xb0] sm:$0xff] %v1361_v59  ;;  %v1353_v16 = vadd.f32 %v2829_v0, %v1352_v18 }
 0x1fe   : > { %v1297_v61 = vadd.f32 %v1572_v60, %v2829_v0  ;;  %v1589_v15 = vpop.f32.mrf.mxu1 }
 0x1ff   : > { %v1288_v62 = vpop.f32.mrf.mxu0  ;;  %1419 = vst [vmem:[%s2832_s25 + $0xa0] sm:$0xff] %v1353_v16  ;;  %v1364_v3 = vadd.f32 %v1589_v15, %v2829_v0 }
 0x200   : > { %1405 = vst [vmem:[%s2832_s25 + $0x30] sm:$0xff] %v1297_v61  ;;  %v1289_v1 = vadd.f32 %v2829_v0, %v1288_v62  ;;  %v1355_v34 = vpop.f32.mrf.mxu1 }
 0x201   : > { %v1573_v55 = vpop.f32.mrf.mxu0  ;;  %1422 = vst [vmem:[%s2832_s25 + $0xb8] sm:$0xff] %v1364_v3  ;;  %v1356_v20 = vadd.f32 %v2829_v0, %v1355_v34 }
 0x202   : > { %1403 = vst [vmem:[%s2832_s25 + $0x20] sm:$0xff] %v1289_v1  ;;  %v1300_v40 = vadd.f32 %v1573_v55, %v2829_v0 }
 0x203   : > { %v1291_v22 = vpop.f32.mrf.mxu0  ;;  %1420 = vst [vmem:[%s2832_s25 + $0xa8] sm:$0xff] %v1356_v20 }
 0x204   : > { %1406 = vst [vmem:[%s2832_s25 + $0x38] sm:$0xff] %v1300_v40  ;;  %v1292_v47 = vadd.f32 %v2829_v0, %v1291_v22 }
 0x206   : > { %1404 = vst [vmem:[%s2832_s25 + $0x28] sm:$0xff] %v1292_v47 }
 0x20b   : > { %v1592_v2 = vpop.f32.mrf.mxu1 }
 0x20c   : > { %v1377_v14 = vadd.f32 %v1592_v2, %v2829_v0 }
 0x20d   : > { %v1368_v31 = vpop.f32.mrf.mxu1 }
 0x20e   : > { %v1576_v44 = vpop.f32.mrf.mxu0  ;;  %1425 = vst [vmem:[%s2832_s25 + $0xd0] sm:$0xff] %v1377_v14  ;;  %v1369_v45 = vadd.f32 %v2829_v0, %v1368_v31 }
 0x20f   : > { %v1313_v21 = vadd.f32 %v1576_v44, %v2829_v0  ;;  %v1593_v10 = vpop.f32.mrf.mxu1 }
 0x210   : > { %v1304_v49 = vpop.f32.mrf.mxu0  ;;  %1423 = vst [vmem:[%s2832_s25 + $0xc0] sm:$0xff] %v1369_v45  ;;  %v1380_v11 = vadd.f32 %v1593_v10, %v2829_v0 }
 0x211   : > { %1409 = vst [vmem:[%s2832_s25 + $0x50] sm:$0xff] %v1313_v21  ;;  %v1305_v25 = vadd.f32 %v2829_v0, %v1304_v49  ;;  %v1371_v23 = vpop.f32.mrf.mxu1 }
 0x212   : > { %v1577_v4 = vpop.f32.mrf.mxu0  ;;  %1426 = vst [vmem:[%s2832_s25 + $0xd8] sm:$0xff] %v1380_v11  ;;  %v1372_v51 = vadd.f32 %v2829_v0, %v1371_v23 }
 0x213   : > { %1407 = vst [vmem:[%s2832_s25 + $0x40] sm:$0xff] %v1305_v25  ;;  %v1316_v52 = vadd.f32 %v1577_v4, %v2829_v0 }
 0x214   : > { %v1307_v27 = vpop.f32.mrf.mxu0  ;;  %1424 = vst [vmem:[%s2832_s25 + $0xc8] sm:$0xff] %v1372_v51 }
 0x215   : > { %1410 = vst [vmem:[%s2832_s25 + $0x58] sm:$0xff] %v1316_v52  ;;  %v1308_v43 = vadd.f32 %v2829_v0, %v1307_v27 }
 0x217   : > { %1408 = vst [vmem:[%s2832_s25 + $0x48] sm:$0xff] %v1308_v43 }
 0x21e   : > { %v1580_v39 = vpop.f32.mrf.mxu0  ;;  %v1596_v13 = vpop.f32.mrf.mxu1 }
 0x21f   : > { %v1329_v29 = vadd.f32 %v1580_v39, %v2829_v0  ;;  %v1393_v37 = vadd.f32 %v1596_v13, %v2829_v0 }
 0x220   : > { %v1320_v53 = vpop.f32.mrf.mxu0  ;;  %v1384_v6 = vpop.f32.mrf.mxu1 }
 0x221   : > { %1413 = vst [vmem:[%s2832_s25 + $0x70] sm:$0xff] %v1329_v29  ;;  %1429 = vst [vmem:[%s2832_s25 + $0xf0] sm:$0xff] %v1393_v37  ;;  %v1321_v38 = vadd.f32 %v2829_v0, %v1320_v53  ;;  %v1385_v7 = vadd.f32 %v2829_v0, %v1384_v6 }
 0x222   : > { %v1581_v8 = vpop.f32.mrf.mxu0  ;;  %v1597_v42 = vpop.f32.mrf.mxu1 }
 0x223   : > { %1411 = vst [vmem:[%s2832_s25 + $0x60] sm:$0xff] %v1321_v38  ;;  %1427 = vst [vmem:[%s2832_s25 + $0xe0] sm:$0xff] %v1385_v7  ;;  %v1332_v26 = vadd.f32 %v1581_v8, %v2829_v0  ;;  %v1396_v63 = vadd.f32 %v1597_v42, %v2829_v0 }
 0x224   : > { %v1323_v56 = vpop.f32.mrf.mxu0  ;;  %v1387_v50 = vpop.f32.mrf.mxu1 }
 0x225   : > { %1414 = vst [vmem:[%s2832_s25 + $0x78] sm:$0xff] %v1332_v26  ;;  %1430 = vst [vmem:[%s2832_s25 + $0xf8] sm:$0xff] %v1396_v63  ;;  %v1324_v24 = vadd.f32 %v2829_v0, %v1323_v56  ;;  %v1388_v58 = vadd.f32 %v2829_v0, %v1387_v50 }
 0x227   : > { %1412 = vst [vmem:[%s2832_s25 + $0x68] sm:$0xff] %v1324_v24  ;;  %1428 = vst [vmem:[%s2832_s25 + $0xe8] sm:$0xff] %v1388_v58 }
 0x228   : > { %1997 = shalt.err (!%p1994_p3)
}
 0x229   : > { %s1998_s9 = scalar_lea.hbm %s2896_s4, 4096  ;;  %s2002_s17 = scalar_lea.hbm %s2952_s3, 8192 }
 0x22a   : > { %p1999_p4 = scmp.ne.s32.totalorder %s2896_s4, %s1998_s9  ;;  %p2003_p9 = scmp.lt.s32.totalorder %s2896_s4, %s2952_s3 }
 0x22b   : > { %p2004_p10 = scmp.lt.s32.totalorder %s2002_s17, %s1998_s9 }
 0x22c   : > { %p2000_p7 = pnand %p1999_p4, %p2111_p5 }
 0x22d   : > { %p2005_p11 = por %p2004_p10, %p2003_p9 }
 0x22e   : > { %p2001_p8 = pneg %p2000_p7 }
 0x230   : > { %p2006_p12 = pnand %p2005_p11, %p2001_p8 }
 0x232   : > { %2009 = shalt.err (!%p2006_p12)
}
 0x233   : > { %s2052_s24 = smov 128  }
 0x234   : > { %1606 = dma.vmem_to_hbm [thread:$0]  (%p2111_p5), %s2902_s27, 4096, %s2896_s4, %s2908_s16, %s2052_s24, %s2052_s24, %s2048_s30  }
 0x235 PF: > { %p1612_p13 = scmp.ge.s32.totalorder %s2044_s15, 2  ;;  %s1460_s25 = sand.u32 1, %s2032_s12  }
 0x236   : > { %s1461_s26 = scalar_lea.sflag [#allocation3], %s1460_s25 }
 0x237   : > { %p1609_p0 = pnand %p1612_p13, %p2115_p6 }
 0x239   : > { %p1610_p1 = pneg %p1609_p0 }
 0x23b   : > { %2027 = dma.done.wait (%p1610_p1), %s1461_s26, 4096  }
 0x23c   : > { %2029 = vsyncadd (%p1610_p1), %s1461_s26, 4294963200  ;;  %p13_p2 = scmp.ge.s32.totalorder %s2098_s18, 4   ;;  %s2955_s12 = smov %s2036_s13 }
 0x23d   : > { %s2956_s13 = smov %s2040_s14  ;;  %s2957_s14 = smov %s2109_s21 }
 0x23e   : > { %s2958_s15 = smov %s2098_s18  ;;  %15 = sbr.rel (!%p13_p2) target bundleno = 3 (0x3), region = 67 }
 0x243   :  { %1466 = vsyncpa [#allocation3], 1 }
 0x244   :  { %1468 = vsyncpa [#allocation3 + $0x1], 1 }

</bundles_post_ra>
